<compile_context>
chip_gen: v7x
topology: tpu7x:2x2x1
jax: 0.10.0
libtpu: 0.0.40
codegen_flags: <defaults>
</compile_context>

<pallas_src>
import functools

import jax
import jax.numpy as jnp
from jax.experimental import pallas as pl
from jax.experimental.pallas import tpu as pltpu


def _round_up(v, m):
    return ((v + m - 1) // m) * m


def _unary_bn_kernel(x_ref, w_ref, o_ref, sum_ref, sumsq_ref, *,
                     n_rows, tile_n, eps, no_relu, compute_dtype):
    phase = pl.program_id(1)   # 0: accumulate stats, 1: normalize + write
    tile = pl.program_id(2)    # row-tile index

    @pl.when(jnp.logical_and(phase == 0, tile == 0))
    def _init():
        sum_ref[...] = jnp.zeros_like(sum_ref)
        sumsq_ref[...] = jnp.zeros_like(sumsq_ref)

    x = x_ref[...]
    w = w_ref[...]
    if compute_dtype is not None:
        x = x.astype(compute_dtype)
        w = w.astype(compute_dtype)
    y = jnp.dot(x, w, preferred_element_type=jnp.float32)   # (tile_n, tile_c)

    @pl.when(phase == 0)
    def _accumulate():
        if n_rows % tile_n != 0:
            # Mask rows belonging to the padded tail of the last tile so they
            # do not bias the InstanceNorm mean / variance.
            rows = jax.lax.broadcasted_iota(jnp.int32, y.shape, 0)
            valid = (tile * tile_n + rows) < n_rows
            ym = jnp.where(valid, y, 0.0)
        else:
            ym = y
        sum_ref[...] += jnp.sum(ym, axis=0, keepdims=True)
        sumsq_ref[...] += jnp.sum(ym * ym, axis=0, keepdims=True)

    @pl.when(phase == 1)
    def _normalize():
        inv_n = jnp.float32(1.0 / n_rows)
        mean = sum_ref[...] * inv_n
        var = jnp.maximum(sumsq_ref[...] * inv_n - mean * mean, 0.0)
        yn = (y - mean) * jax.lax.rsqrt(var + eps)
        if not no_relu:
            yn = jnp.maximum(yn, 0.1 * yn)                   # LeakyReLU(0.1)
        o_ref[...] = yn.astype(o_ref.dtype)


def _unary_nobn_kernel(x_ref, w_ref, b_ref, o_ref, *, no_relu, compute_dtype):
    x = x_ref[...]
    w = w_ref[...]
    if compute_dtype is not None:
        x = x.astype(compute_dtype)
        w = w.astype(compute_dtype)
    y = jnp.dot(x, w, preferred_element_type=jnp.float32)
    y = y + b_ref[...]
    if not no_relu:
        y = jnp.maximum(y, 0.1 * y)                          # LeakyReLU(0.1)
    o_ref[...] = y.astype(o_ref.dtype)


def unary_block(x, w_t, bias=None, *, use_bn=True, no_relu=False, eps=1e-5,
                tile_n=512, tile_c=512, compute_dtype=None):
    """UnaryBlock forward.

    x: [N, C_in] f32, w_t: [C_in, C_out] (= Linear.weight.T),
    bias: [1, C_out] (only used when use_bn=False).
    compute_dtype: set to jnp.bfloat16 to feed the MXU bf16 inputs (f32
    accumulate) and halve x/w DMA bytes; default None keeps full f32.
    """
    n_rows, c_in = x.shape
    assert w_t.shape[0] == c_in
    c_out = w_t.shape[1]
    out_dtype = x.dtype

    # Lane-dense output channels: pad C_out to a multiple of 128 and tile it.
    c_out_128 = _round_up(c_out, 128)
    tile_c = min(_round_up(tile_c, 128), c_out_128)
    if c_out_128 % tile_c != 0:
        tile_c = c_out_128
    c_out_p = c_out_128
    if c_out_p != c_out:
        w_t = jnp.pad(w_t, ((0, 0), (0, c_out_p - c_out)))
        if bias is not None:
            bias = jnp.pad(bias, ((0, 0), (0, c_out_p - c_out)))

    # Row tiling (multiple of 8 sublanes; partial last tile handled in-kernel).
    tile_n = min(_round_up(tile_n, 8), _round_up(n_rows, 8))
    num_tiles = pl.cdiv(n_rows, tile_n)
    num_co = c_out_p // tile_c

    out_shape = jax.ShapeDtypeStruct((n_rows, c_out_p), out_dtype)

    if use_bn:
        kernel = functools.partial(
            _unary_bn_kernel, n_rows=n_rows, tile_n=tile_n, eps=eps,
            no_relu=no_relu, compute_dtype=compute_dtype)
        out = pl.pallas_call(
            kernel,
            out_shape=out_shape,
            grid=(num_co, 2, num_tiles),
            in_specs=[
                pl.BlockSpec((tile_n, c_in), lambda co, p, i: (i, 0)),
                pl.BlockSpec((c_in, tile_c), lambda co, p, i: (0, co)),
            ],
            # Output tiles are only produced in phase 1; during phase 0 the
            # block index is pinned to (0, co) so no garbage writebacks occur.
            out_specs=pl.BlockSpec((tile_n, tile_c),
                                   lambda co, p, i: (i * p, co)),
            scratch_shapes=[
                pltpu.VMEM((1, tile_c), jnp.float32),   # per-channel sum
                pltpu.VMEM((1, tile_c), jnp.float32),   # per-channel sum-of-sq
            ],
            compiler_params=pltpu.CompilerParams(
                dimension_semantics=("parallel", "arbitrary", "arbitrary"),
                vmem_limit_bytes=32 * 1024 * 1024,
            ),
        )(x, w_t)
    else:
        if bias is None:
            bias = jnp.zeros((1, c_out_p), dtype=jnp.float32)
        kernel = functools.partial(
            _unary_nobn_kernel, no_relu=no_relu, compute_dtype=compute_dtype)
        out = pl.pallas_call(
            kernel,
            out_shape=out_shape,
            grid=(num_co, num_tiles),
            in_specs=[
                pl.BlockSpec((tile_n, c_in), lambda co, i: (i, 0)),
                pl.BlockSpec((c_in, tile_c), lambda co, i: (0, co)),
                pl.BlockSpec((1, tile_c), lambda co, i: (0, co)),
            ],
            out_specs=pl.BlockSpec((tile_n, tile_c), lambda co, i: (i, co)),
            compiler_params=pltpu.CompilerParams(
                dimension_semantics=("parallel", "parallel"),
                vmem_limit_bytes=32 * 1024 * 1024,
            ),
        )(x, w_t, bias)

    if c_out_p != c_out:
        out = out[:, :c_out]
    return out


def _reference(x, w_t, bias, *, use_bn=True, no_relu=False, eps=1e-5):
    y = x @ w_t
    if use_bn:
        mean = jnp.mean(y, axis=0, keepdims=True)
        var = jnp.mean((y - mean) ** 2, axis=0, keepdims=True)
        y = (y - mean) / jnp.sqrt(var + eps)
    else:
        y = y + bias
    if not no_relu:
        y = jnp.where(y >= 0, y, 0.1 * y)
    return y


if __name__ == "__main__":
    # Small shapes consistent with the module: N points, in_dim -> out_dim.
    # N deliberately not a tile multiple and out_dim not a 128 multiple to
    # exercise the row-masking and lane-padding paths.
    N, in_dim, out_dim = 1000, 64, 96

    key = jax.random.PRNGKey(0)
    kx, kw = jax.random.split(key)
    x = jax.random.normal(kx, (N, in_dim), dtype=jnp.float32)
    # Deterministic init mimicking nn.Linear's uniform(-1/sqrt(in), 1/sqrt(in)).
    bound = 1.0 / (in_dim ** 0.5)
    w = jax.random.uniform(kw, (out_dim, in_dim), dtype=jnp.float32,
                           minval=-bound, maxval=bound)
    w_t = w.T                                         # [in_dim, out_dim]
    bias = jnp.zeros((1, out_dim), dtype=jnp.float32)  # BatchNormBlock bias

    # use_bn=True path (InstanceNorm over points + LeakyReLU).
    out_bn = jax.block_until_ready(unary_block(x, w_t, use_bn=True,
                                               no_relu=False))
    ref_bn = _reference(x, w_t, bias, use_bn=True, no_relu=False)
    assert out_bn.shape == (N, out_dim)
    assert jnp.max(jnp.abs(out_bn - ref_bn)) < 5e-4

    # use_bn=False path (bias add + LeakyReLU).
    out_nb = jax.block_until_ready(unary_block(x, w_t, bias, use_bn=False,
                                               no_relu=False))
    ref_nb = _reference(x, w_t, bias, use_bn=False, no_relu=False)
    assert out_nb.shape == (N, out_dim)
    assert jnp.max(jnp.abs(out_nb - ref_nb)) < 5e-4

    print("KERNEL_OK")
</pallas_src>

<mosaic_0001>
module attributes {stable_mosaic.version = 11 : i64} {
  func.func @_unary_bn_kernel(%arg0: i32, %arg1: i32, %arg2: i32, %arg3: memref<512x64xf32, #tpu.memory_space<vmem>>, %arg4: memref<64x128xf32, #tpu.memory_space<vmem>>, %arg5: memref<512x128xf32, #tpu.memory_space<vmem>>, %arg6: memref<1x128xf32, #tpu.memory_space<vmem>>, %arg7: memref<1x128xf32, #tpu.memory_space<vmem>>) attributes {dimension_semantics = [#tpu.dimension_semantics<parallel>, #tpu.dimension_semantics<arbitrary>, #tpu.dimension_semantics<arbitrary>], iteration_bounds = array<i64: 1, 2, 2>, scalar_prefetch = 0 : i64, scratch_operands = 2 : i64, tpu.core_type = #tpu.core_type<tc>, window_params = [{transform_indices = @transform_0, window_bounds = array<i64: 512, 64>}, {transform_indices = @transform_1, window_bounds = array<i64: 64, 128>}, {transform_indices = @transform_2, window_bounds = array<i64: 512, 128>}]} {
    %c0_i32 = arith.constant 0 : i32
    %0 = arith.cmpi eq, %arg1, %c0_i32 : i32
    %c0_i32_0 = arith.constant 0 : i32
    %1 = arith.cmpi eq, %arg2, %c0_i32_0 : i32
    %2 = arith.andi %0, %1 : i1
    %3 = arith.extui %2 : i1 to i32
    %c0_i32_1 = arith.constant 0 : i32
    %4 = arith.cmpi ne, %3, %c0_i32_1 : i32
    scf.if %4 {
      %cst_8 = arith.constant 0.000000e+00 : f32
      %14 = vector.broadcast %cst_8 : f32 to vector<1x128xf32>
      %c0_9 = arith.constant 0 : index
      %c0_10 = arith.constant 0 : index
      %15 = vector.load %arg6[%c0_9, %c0_10] : memref<1x128xf32, #tpu.memory_space<vmem>>, vector<1x128xf32>
      tpu.vector_store %arg6[%c0_9, %c0_10], %14 {strides = array<i32>} : memref<1x128xf32, #tpu.memory_space<vmem>>, vector<1x128xf32>,
      %cst_11 = arith.constant 0.000000e+00 : f32
      %16 = vector.broadcast %cst_11 : f32 to vector<1x128xf32>
      %c0_12 = arith.constant 0 : index
      %c0_13 = arith.constant 0 : index
      %17 = vector.load %arg7[%c0_12, %c0_13] : memref<1x128xf32, #tpu.memory_space<vmem>>, vector<1x128xf32>
      tpu.vector_store %arg7[%c0_12, %c0_13], %16 {strides = array<i32>} : memref<1x128xf32, #tpu.memory_space<vmem>>, vector<1x128xf32>,
    } else {
    }
    %c0 = arith.constant 0 : index
    %c0_2 = arith.constant 0 : index
    %5 = vector.load %arg3[%c0, %c0_2] : memref<512x64xf32, #tpu.memory_space<vmem>>, vector<512x64xf32>
    %c0_3 = arith.constant 0 : index
    %c0_4 = arith.constant 0 : index
    %6 = vector.load %arg4[%c0_3, %c0_4] : memref<64x128xf32, #tpu.memory_space<vmem>>, vector<64x128xf32>
    %cst = arith.constant dense<0.000000e+00> : vector<512x128xf32>
    %7 = tpu.matmul %5, %6, %cst {dimension_numbers = #tpu.dot_dimension_numbers<[1], [0], [0], [1], [0, 0, 1, 1], [], []>} : vector<512x64xf32>, vector<64x128xf32>, vector<512x128xf32> -> vector<512x128xf32>
    %c0_i32_5 = arith.constant 0 : i32
    %8 = arith.cmpi eq, %arg1, %c0_i32_5 : i32
    %9 = arith.extui %8 : i1 to i32
    %c0_i32_6 = arith.constant 0 : i32
    %10 = arith.cmpi ne, %9, %c0_i32_6 : i32
    scf.if %10 {
      %14 = tpu.iota {dimensions = array<i32: 0>} : vector<512x128xi32>
      %c512_i32 = arith.constant 512 : i32
      %15 = arith.muli %arg2, %c512_i32 : i32
      %16 = vector.broadcast %15 : i32 to vector<512x128xi32>
      %17 = arith.addi %16, %14 : vector<512x128xi32>
      %c1000_i32 = arith.constant 1000 : i32
      %18 = vector.broadcast %c1000_i32 : i32 to vector<512x128xi32>
      %19 = arith.cmpi slt, %17, %18 : vector<512x128xi32>
      %cst_8 = arith.constant 0.000000e+00 : f32
      %20 = vector.broadcast %cst_8 : f32 to vector<512x128xf32>
      %21 = arith.select %19, %7, %20 : vector<512x128xi1>, vector<512x128xf32>
      %c0_9 = arith.constant 0 : index
      %c0_10 = arith.constant 0 : index
      %22 = vector.load %arg6[%c0_9, %c0_10] : memref<1x128xf32, #tpu.memory_space<vmem>>, vector<1x128xf32>
      %cst_11 = arith.constant dense<0.000000e+00> : vector<128xf32>
      %23 = vector.multi_reduction <add>, %21, %cst_11 [0] : vector<512x128xf32> to vector<128xf32>
      %24 = vector.shape_cast %23 : vector<128xf32> to vector<1x128xf32>
      %25 = arith.addf %22, %24 : vector<1x128xf32>
      %c0_12 = arith.constant 0 : index
      %c0_13 = arith.constant 0 : index
      %26 = vector.load %arg6[%c0_12, %c0_13] : memref<1x128xf32, #tpu.memory_space<vmem>>, vector<1x128xf32>
      tpu.vector_store %arg6[%c0_12, %c0_13], %25 {strides = array<i32>} : memref<1x128xf32, #tpu.memory_space<vmem>>, vector<1x128xf32>,
      %c0_14 = arith.constant 0 : index
      %c0_15 = arith.constant 0 : index
      %27 = vector.load %arg7[%c0_14, %c0_15] : memref<1x128xf32, #tpu.memory_space<vmem>>, vector<1x128xf32>
      %28 = arith.mulf %21, %21 : vector<512x128xf32>
      %cst_16 = arith.constant dense<0.000000e+00> : vector<128xf32>
      %29 = vector.multi_reduction <add>, %28, %cst_16 [0] : vector<512x128xf32> to vector<128xf32>
      %30 = vector.shape_cast %29 : vector<128xf32> to vector<1x128xf32>
      %31 = arith.addf %27, %30 : vector<1x128xf32>
      %c0_17 = arith.constant 0 : index
      %c0_18 = arith.constant 0 : index
      %32 = vector.load %arg7[%c0_17, %c0_18] : memref<1x128xf32, #tpu.memory_space<vmem>>, vector<1x128xf32>
      tpu.vector_store %arg7[%c0_17, %c0_18], %31 {strides = array<i32>} : memref<1x128xf32, #tpu.memory_space<vmem>>, vector<1x128xf32>,
    } else {
    }
    %c1_i32 = arith.constant 1 : i32
    %11 = arith.cmpi eq, %arg1, %c1_i32 : i32
    %12 = arith.extui %11 : i1 to i32
    %c0_i32_7 = arith.constant 0 : i32
    %13 = arith.cmpi ne, %12, %c0_i32_7 : i32
    scf.if %13 {
      %c0_8 = arith.constant 0 : index
      %c0_9 = arith.constant 0 : index
      %14 = vector.load %arg6[%c0_8, %c0_9] : memref<1x128xf32, #tpu.memory_space<vmem>>, vector<1x128xf32>
      %cst_10 = arith.constant 1.000000e-03 : f32
      %15 = vector.broadcast %cst_10 : f32 to vector<1x128xf32>
      %16 = arith.mulf %14, %15 : vector<1x128xf32>
      %c0_11 = arith.constant 0 : index
      %c0_12 = arith.constant 0 : index
      %17 = vector.load %arg7[%c0_11, %c0_12] : memref<1x128xf32, #tpu.memory_space<vmem>>, vector<1x128xf32>
      %cst_13 = arith.constant 1.000000e-03 : f32
      %18 = vector.broadcast %cst_13 : f32 to vector<1x128xf32>
      %19 = arith.mulf %17, %18 : vector<1x128xf32>
      %20 = arith.mulf %16, %16 : vector<1x128xf32>
      %21 = arith.subf %19, %20 : vector<1x128xf32>
      %cst_14 = arith.constant 0.000000e+00 : f32
      %22 = vector.broadcast %cst_14 : f32 to vector<1x128xf32>
      %23 = arith.maximumf %21, %22 : vector<1x128xf32>
      %24 = vector.broadcast %16 : vector<1x128xf32> to vector<512x128xf32>
      %25 = arith.subf %7, %24 : vector<512x128xf32>
      %cst_15 = arith.constant 9.99999974E-6 : f32
      %26 = vector.broadcast %cst_15 : f32 to vector<1x128xf32>
      %27 = arith.addf %23, %26 : vector<1x128xf32>
      %28 = math.rsqrt %27 : vector<1x128xf32>
      %29 = vector.broadcast %28 : vector<1x128xf32> to vector<512x128xf32>
      %30 = arith.mulf %25, %29 : vector<512x128xf32>
      %cst_16 = arith.constant 1.000000e-01 : f32
      %31 = vector.broadcast %cst_16 : f32 to vector<512x128xf32>
      %32 = arith.mulf %31, %30 : vector<512x128xf32>
      %33 = arith.maximumf %30, %32 : vector<512x128xf32>
      %c0_17 = arith.constant 0 : index
      %c0_18 = arith.constant 0 : index
      %34 = vector.load %arg5[%c0_17, %c0_18] : memref<512x128xf32, #tpu.memory_space<vmem>>, vector<512x128xf32>
      tpu.vector_store %arg5[%c0_17, %c0_18], %33 {strides = array<i32>} : memref<512x128xf32, #tpu.memory_space<vmem>>, vector<512x128xf32>,
    } else {
    }
    return
  }
  func.func @transform_0(%arg0: i32, %arg1: i32, %arg2: i32) -> (i32, i32) {
    %c0_i32 = arith.constant 0 : i32
    %c0_i32_0 = arith.constant 0 : i32
    return %arg2, %c0_i32 : i32, i32
  }
  func.func @transform_1(%arg0: i32, %arg1: i32, %arg2: i32) -> (i32, i32) {
    %c0_i32 = arith.constant 0 : i32
    %c0_i32_0 = arith.constant 0 : i32
    return %c0_i32, %arg0 : i32, i32
  }
  func.func @transform_2(%arg0: i32, %arg1: i32, %arg2: i32) -> (i32, i32) {
    %0 = arith.muli %arg2, %arg1 : i32
    %c0_i32 = arith.constant 0 : i32
    return %0, %arg0 : i32, i32
  }
}

</mosaic_0001>

<bundles_post_ra>
// kernel: tpu_custom_call.1
= control target key start
LH: loop header
LB: loop body
LE: loop exit
PB: predicated region body
PF: predicated region fallthrough
CT: control target
= control target key end

     0   :  { %7 = vsyncpa [#allocation5], 0  ;;  %s3458_s0 = inlined_call_operand.vmem [shape: f32[1000,64], index: 0, kind: input, shape index: {}]   ;;  %s3459_s1 = inlined_call_operand.vmem [shape: f32[64,128], index: 1, kind: input, shape index: {}]   ;;  %s3460_s2 = inlined_call_operand.hbm [shape: f32[1000,128], index: 2, kind: output, shape index: {}]  }
   0x1   :  { %9 = vsyncpa [#allocation5 + $0x1], 0  ;;  %s2282_s9 = smov 0   ;;  %s2284_s10 = smov 0  }
   0x2   :  { %s2286_s11 = smov 0   ;;  %s2288_s12 = smov 0  }
   0x3   :  { %s2290_s13 = smov 0   ;;  %s2292_s14 = smov 0  }
   0x4   :  { %s2294_s15 = smov 0   ;;  %s2296_s16 = smov 0  }
   0x5 LB: > { %s1798_s17 = sadd.s32 4294967295, %s2261_s16   ;;  %s1799_s18 = sadd.s32 4294967294, %s2261_s16   ;;  %s2261_s16 = sphi %s2296_s16, %s15_s16   ;;  %s2257_s15 = sphi %s2294_s15, %s3782_s15   ;;  %s2253_s14 = sphi %s2292_s14, %s3781_s14   ;;  %s2249_s13 = sphi %s2290_s13, %s3780_s13   ;;  %s2245_s12 = sphi %s2288_s12, %s3779_s12   ;;  %s2241_s11 = sphi %s2286_s11, %s3778_s11   ;;  %s2237_s10 = sphi %s2284_s10, %s3777_s10   ;;  %s2233_s9 = sphi %s2282_s9, %s3776_s9  }
   0x6   : > { %s27_s19 = sadd.s32 1, %s2253_s14  ;;  %s30_s20 = sadd.s32 1, %s2257_s15 }
   0x7   : > { %p28_p0 = scmp.ge.s32.totalorder %s27_s19, 2  ;;  %s90_s21 = smul.u32 %s2253_s14, %s2257_s15 }
   0x8   : > { %p107_p1 = scmp.ne.s32.totalorder %s2241_s11, %s2237_s10  ;;  %p108_p2 = scmp.eq.s32.totalorder %s1798_s17, 3 }
   0x9   : > { %s3784_s19 = smov (%p28_p0, %s27_s19), 0  ;;  %s3786_s20 = smov (!%p28_p0, %s30_s20), %s2257_s15 }
   0xa   : > { %p113_p3 = scmp.ne.s32.totalorder %s2237_s10, %s2233_s9  ;;  %p32_p4 = scmp.ge.s32.totalorder %s3786_s20, 2 }
   0xb   : > { %p114_p5 = scmp.eq.s32.totalorder %s1799_s18, 3  ;;  %p2335_p6 = por %p108_p2, %p107_p1 }
   0xc   : > { %p1803_p7 = scmp.ge.s32.totalorder %s2261_s16, 1  ;;  %s3788_s20 = smov (%p32_p4, %s3786_s20), 0 }
   0xd   : > { %p2342_p8 = por %p114_p5, %p113_p3  ;;  %p156_p9 = scmp.lt.s32.totalorder %s2261_s16, 5 }
   0xe   : > { %s91_s24 = smul.u32 %s3788_s20, %s3784_s19  ;;  %s97_s26 = sadd.s32 1, %s2241_s11 }
   0xf   : > { %p157_p10 = pnand %p1803_p7, %p156_p9 }
  0x10   : > { %s92_s25 = ssub.s32 %s90_s21, %s91_s24 }
  0x11   : > { %p95_p11 = scmp.eq.s32.totalorder %s92_s25, 0  ;;  %160 = sbr.rel (%p157_p10) target bundleno = 638 (0x27e), region = 28 }
  0x13   : > { %s2351_s27 = scalar_select %p95_p11, %s2241_s11, %s97_s26  }
  0x18   : > { %s183_s28 = sand.u32 1, %s2237_s10   ;;  %s1805_s29 = sshll.u32 %s2245_s12, 6 }
  0x19   : > { %s1804_s30 = sshll.u32 %s183_s28, 9  ;;  %p191_p12 = scmp.lt.s32.totalorder %s1805_s29, 124 }
  0x1a   : > { %p210_p13 = scmp.eq.s32.totalorder %s2249_s13, 0  ;;  %p211_p0 = scmp.eq.s32.totalorder %s2245_s12, 0 }
  0x1b   : > { %s3790_s29 = smov (!%p191_p12, %s1805_s29), 124  ;;  %s2364_s7 = scalar_lea.vmem [#allocation4], %s1804_s30 }
  0x1c   : > { %s1806_s3 = sshll.u32 %s3790_s29, 3  ;;  %p212_p1 = pnand %p211_p0, %p210_p13 }
  0x1d   : > { %s2362_s6 = scalar_lea.vmem %s3458_s0, %s1806_s3  ;;  %v2263_v0 = vmov (!%p212_p1), 0.0  }
  0x1e   : > { %215 = sbr.rel (%p212_p1) target bundleno = 37 (0x25), region = 32  ;;  %216 = vst [vmem:[#allocation2] sm:$0x1] (!%p212_p1), %v2263_v0  ;;  %217 = vst [vmem:[#allocation3] sm:$0x1] (!%p212_p1), %v2263_v0 }
  0x25 PF: > { %v282_v1 = vld [vmem:[%s3459_s1] sm:$0xff]  ;;  %v283_v2 = vld [vmem:[%s3459_s1 + $0x8] sm:$0xff]  ;;  %v284_v3 = vld [vmem:[%s3459_s1 + $0x10] sm:$0xff]  ;;  %vm290_vm0 = vcmask 523264   ;;  %p1871_p2 = scmp.ne.s32.totalorder %s2249_s13, 0 }
  0x26   : > { %v2068_v4 = vpack.c.bf16 %v283_v2, %v282_v1  ;;  %v285_v5 = vld [vmem:[%s3459_s1 + $0x18] sm:$0xff]  ;;  %v286_v7 = vld [vmem:[%s3459_s1 + $0x20] sm:$0xff]  ;;  %v287_v8 = vld [vmem:[%s3459_s1 + $0x28] sm:$0xff] }
  0x27   : > { %v2072_v6 = vpack.c.bf16 %v285_v5, %v284_v3  ;;  %v218_v9 = vld [vmem:[%s2362_s6] sm:$0xff]  ;;  %v2076_v11 = vpack.c.bf16 %v287_v8, %v286_v7  ;;  %v288_v12 = vld [vmem:[%s3459_s1 + $0x30] sm:$0xff]  ;;  %v289_v13 = vld [vmem:[%s3459_s1 + $0x38] sm:$0xff] }
  0x28   : > { %2069 = vmatprep.subr.bf16.mxu0 %v2068_v4  ;;  %2084 = vmatprep.subr.bf16.mxu1 %v2068_v4  ;;  %v250_v10 = vld [vmem:[%s2362_s6 + $0x100] sm:$0xff]  ;;  %v2080_v14 = vpack.c.bf16 %v289_v13, %v288_v12  ;;  %v219_v15 = vld [vmem:[%s2362_s6 + $0x8] sm:$0xff]  ;;  %v220_v17 = vld [vmem:[%s2362_s6 + $0x10] sm:$0xff] }
  0x29   : > { %2071 = vmatpush3.bf16.msra.mxu0 %v2068_v4  ;;  %2088 = vmatpush3.bf16.msra.mxu1 %v2068_v4  ;;  %v251_v16 = vld [vmem:[%s2362_s6 + $0x108] sm:$0xff]  ;;  %v252_v18 = vld [vmem:[%s2362_s6 + $0x110] sm:$0xff]  ;;  %v221_v19 = vld [vmem:[%s2362_s6 + $0x18] sm:$0xff] }
  0x2a   : > { %2073 = vmatprep.subr.bf16.mxu0 %v2072_v6  ;;  %2085 = vmatprep.subr.bf16.mxu1 %v2072_v6  ;;  %v253_v20 = vld [vmem:[%s2362_s6 + $0x118] sm:$0xff]  ;;  %v222_v21 = vld [vmem:[%s2362_s6 + $0x20] sm:$0xff]  ;;  %v223_v23 = vld [vmem:[%s2362_s6 + $0x28] sm:$0xff] }
  0x2b   : > { %1972 = vmatprep.mubr.msk.f32.mxu0 %vm290_vm0, %v218_v9  ;;  %2020 = vmatprep.mubr.msk.f32.mxu1 %vm290_vm0, %v250_v10  ;;  %v254_v22 = vld [vmem:[%s2362_s6 + $0x120] sm:$0xff]  ;;  %v255_v24 = vld [vmem:[%s2362_s6 + $0x128] sm:$0xff]  ;;  %v224_v25 = vld [vmem:[%s2362_s6 + $0x30] sm:$0xff] }
  0x2c   : > { %v256_v26 = vld [vmem:[%s2362_s6 + $0x130] sm:$0xff]  ;;  %v225_v27 = vld [vmem:[%s2362_s6 + $0x38] sm:$0xff]  ;;  %v226_v29 = vld [vmem:[%s2362_s6 + $0x40] sm:$0xff] }
  0x2d   : > { %2075 = vmatpush3.bf16.msra.mxu0 %v2072_v6  ;;  %2089 = vmatpush3.bf16.msra.mxu1 %v2072_v6  ;;  %v257_v28 = vld [vmem:[%s2362_s6 + $0x138] sm:$0xff]  ;;  %v258_v30 = vld [vmem:[%s2362_s6 + $0x140] sm:$0xff]  ;;  %v227_v31 = vld [vmem:[%s2362_s6 + $0x48] sm:$0xff] }
  0x2e   : > { %2077 = vmatprep.subr.bf16.mxu0 %v2076_v11  ;;  %2086 = vmatprep.subr.bf16.mxu1 %v2076_v11  ;;  %v259_v32 = vld [vmem:[%s2362_s6 + $0x148] sm:$0xff]  ;;  %v228_v33 = vld [vmem:[%s2362_s6 + $0x50] sm:$0xff]  ;;  %v229_v35 = vld [vmem:[%s2362_s6 + $0x58] sm:$0xff] }
  0x2f   : > { %v260_v34 = vld [vmem:[%s2362_s6 + $0x150] sm:$0xff]  ;;  %v261_v36 = vld [vmem:[%s2362_s6 + $0x158] sm:$0xff]  ;;  %v230_v37 = vld [vmem:[%s2362_s6 + $0x60] sm:$0xff] }
  0x30   : > { %v262_v38 = vld [vmem:[%s2362_s6 + $0x160] sm:$0xff]  ;;  %v231_v39 = vld [vmem:[%s2362_s6 + $0x68] sm:$0xff]  ;;  %v232_v41 = vld [vmem:[%s2362_s6 + $0x70] sm:$0xff] }
  0x31   : > { %2079 = vmatpush3.bf16.msra.mxu0 %v2076_v11  ;;  %2090 = vmatpush3.bf16.msra.mxu1 %v2076_v11  ;;  %v263_v40 = vld [vmem:[%s2362_s6 + $0x168] sm:$0xff]  ;;  %v264_v42 = vld [vmem:[%s2362_s6 + $0x170] sm:$0xff]  ;;  %v233_v43 = vld [vmem:[%s2362_s6 + $0x78] sm:$0xff] }
  0x32   : > { %2081 = vmatprep.subr.bf16.mxu0 %v2080_v14  ;;  %2087 = vmatprep.subr.bf16.mxu1 %v2080_v14  ;;  %v265_v44 = vld [vmem:[%s2362_s6 + $0x178] sm:$0xff]  ;;  %v234_v45 = vld [vmem:[%s2362_s6 + $0x80] sm:$0xff]  ;;  %v235_v47 = vld [vmem:[%s2362_s6 + $0x88] sm:$0xff] }
  0x33   : > { %v266_v46 = vld [vmem:[%s2362_s6 + $0x180] sm:$0xff]  ;;  %v267_v48 = vld [vmem:[%s2362_s6 + $0x188] sm:$0xff]  ;;  %v236_v49 = vld [vmem:[%s2362_s6 + $0x90] sm:$0xff] }
  0x34   : > { %v268_v50 = vld [vmem:[%s2362_s6 + $0x190] sm:$0xff]  ;;  %v237_v51 = vld [vmem:[%s2362_s6 + $0x98] sm:$0xff]  ;;  %v238_v53 = vld [vmem:[%s2362_s6 + $0xa0] sm:$0xff] }
  0x35   : > { %2083 = vmatpush3.bf16.msra.mxu0 %v2080_v14  ;;  %2091 = vmatpush3.bf16.msra.mxu1 %v2080_v14  ;;  %v269_v52 = vld [vmem:[%s2362_s6 + $0x198] sm:$0xff]  ;;  %v270_v54 = vld [vmem:[%s2362_s6 + $0x1a0] sm:$0xff]  ;;  %v239_v55 = vld [vmem:[%s2362_s6 + $0xa8] sm:$0xff] }
  0x36   : > { %v271_v56 = vld [vmem:[%s2362_s6 + $0x1a8] sm:$0xff]  ;;  %v240_v57 = vld [vmem:[%s2362_s6 + $0xb0] sm:$0xff]  ;;  %v241_v59 = vld [vmem:[%s2362_s6 + $0xb8] sm:$0xff] }
  0x37   : > { %v272_v58 = vld [vmem:[%s2362_s6 + $0x1b0] sm:$0xff]  ;;  %v273_v60 = vld [vmem:[%s2362_s6 + $0x1b8] sm:$0xff]  ;;  %v242_v61 = vld [vmem:[%s2362_s6 + $0xc0] sm:$0xff] }
  0x38   : > { %1973 = vmatmul.mubr.msk.f32.vlgmr.msra.gmra.mrb[0].mxu0 %vm290_vm0, %v219_v15  ;;  %2021 = vmatmul.mubr.msk.f32.vlgmr.msra.gmra.mrb[0].mxu1 %vm290_vm0, %v251_v16  ;;  %v274_v62 = vld [vmem:[%s2362_s6 + $0x1c0] sm:$0xff]  ;;  %v243_v63 = vld [vmem:[%s2362_s6 + $0xc8] sm:$0xff]  ;;  %v244_v1 = vld [vmem:[%s2362_s6 + $0xd0] sm:$0xff] }
  0x39   : > { %1975 = vmatprep.mubr.msk.f32.mxu0 %vm290_vm0, %v220_v17  ;;  %2023 = vmatprep.mubr.msk.f32.mxu1 %vm290_vm0, %v252_v18  ;;  %v275_v0 = vld [vmem:[%s2362_s6 + $0x1c8] sm:$0xff]  ;;  %v276_v2 = vld [vmem:[%s2362_s6 + $0x1d0] sm:$0xff]  ;;  %v245_v3 = vld [vmem:[%s2362_s6 + $0xd8] sm:$0xff] }
  0x3a   : > { %v277_v4 = vld [vmem:[%s2362_s6 + $0x1d8] sm:$0xff]  ;;  %v246_v5 = vld [vmem:[%s2362_s6 + $0xe0] sm:$0xff]  ;;  %v247_v7 = vld [vmem:[%s2362_s6 + $0xe8] sm:$0xff] }
  0x3b   : > { %v278_v6 = vld [vmem:[%s2362_s6 + $0x1e0] sm:$0xff]  ;;  %v279_v8 = vld [vmem:[%s2362_s6 + $0x1e8] sm:$0xff]  ;;  %v248_v9 = vld [vmem:[%s2362_s6 + $0xf0] sm:$0xff] }
  0x3c   : > { %1976 = vmatmul.mubr.msk.f32.gmra.mrb[2].mxu0 %vm290_vm0, %v221_v19  ;;  %2024 = vmatmul.mubr.msk.f32.gmra.mrb[2].mxu1 %vm290_vm0, %v253_v20  ;;  %v280_v10 = vld [vmem:[%s2362_s6 + $0x1f0] sm:$0xff]  ;;  %v249_v11 = vld [vmem:[%s2362_s6 + $0xf8] sm:$0xff] }
  0x3d   : > { %1978 = vmatprep.mubr.msk.f32.mxu0 %vm290_vm0, %v222_v21  ;;  %2026 = vmatprep.mubr.msk.f32.mxu1 %vm290_vm0, %v254_v22  ;;  %v281_v12 = vld [vmem:[%s2362_s6 + $0x1f8] sm:$0xff] }
  0x40   : > { %1979 = vmatmul.mubr.msk.f32.gmra.mrb[4].mxu0 %vm290_vm0, %v223_v23  ;;  %2027 = vmatmul.mubr.msk.f32.gmra.mrb[4].mxu1 %vm290_vm0, %v255_v24 }
  0x41   : > { %1981 = vmatprep.mubr.msk.f32.mxu0 %vm290_vm0, %v224_v25  ;;  %2029 = vmatprep.mubr.msk.f32.mxu1 %vm290_vm0, %v256_v26 }
  0x44   : > { %1982 = vmatmul.mubr.msk.f32.gmra.mrb[6].mxu0 %vm290_vm0, %v225_v27  ;;  %2030 = vmatmul.mubr.msk.f32.gmra.mrb[6].mxu1 %vm290_vm0, %v257_v28 }
  0x45   : > { %1984 = vmatprep.mubr.msk.f32.mxu0 %vm290_vm0, %v226_v29  ;;  %2032 = vmatprep.mubr.msk.f32.mxu1 %vm290_vm0, %v258_v30 }
  0x48   : > { %1985 = vmatmul.mubr.msk.f32.gmra.mrb[8].mxu0 %vm290_vm0, %v227_v31  ;;  %2033 = vmatmul.mubr.msk.f32.gmra.mrb[8].mxu1 %vm290_vm0, %v259_v32 }
  0x49   : > { %1987 = vmatprep.mubr.msk.f32.mxu0 %vm290_vm0, %v228_v33  ;;  %2035 = vmatprep.mubr.msk.f32.mxu1 %vm290_vm0, %v260_v34 }
  0x4c   : > { %1988 = vmatmul.mubr.msk.f32.gmra.mrb[10].mxu0 %vm290_vm0, %v229_v35  ;;  %2036 = vmatmul.mubr.msk.f32.gmra.mrb[10].mxu1 %vm290_vm0, %v261_v36 }
  0x4d   : > { %1990 = vmatprep.mubr.msk.f32.mxu0 %vm290_vm0, %v230_v37  ;;  %2038 = vmatprep.mubr.msk.f32.mxu1 %vm290_vm0, %v262_v38 }
  0x50   : > { %1991 = vmatmul.mubr.msk.f32.gmra.mrb[12].mxu0 %vm290_vm0, %v231_v39  ;;  %2039 = vmatmul.mubr.msk.f32.gmra.mrb[12].mxu1 %vm290_vm0, %v263_v40 }
  0x51   : > { %1993 = vmatprep.mubr.msk.f32.mxu0 %vm290_vm0, %v232_v41  ;;  %2041 = vmatprep.mubr.msk.f32.mxu1 %vm290_vm0, %v264_v42 }
  0x54   : > { %1994 = vmatmul.mubr.msk.f32.gmra.mrb[14].mxu0 %vm290_vm0, %v233_v43  ;;  %2042 = vmatmul.mubr.msk.f32.gmra.mrb[14].mxu1 %vm290_vm0, %v265_v44 }
  0x55   : > { %1996 = vmatprep.mubr.msk.f32.mxu0 %vm290_vm0, %v234_v45  ;;  %2044 = vmatprep.mubr.msk.f32.mxu1 %vm290_vm0, %v266_v46 }
  0x58   : > { %1997 = vmatmul.mubr.msk.f32.gmra.mrb[16].mxu0 %vm290_vm0, %v235_v47  ;;  %2045 = vmatmul.mubr.msk.f32.gmra.mrb[16].mxu1 %vm290_vm0, %v267_v48 }
  0x59   : > { %1999 = vmatprep.mubr.msk.f32.mxu0 %vm290_vm0, %v236_v49  ;;  %2047 = vmatprep.mubr.msk.f32.mxu1 %vm290_vm0, %v268_v50 }
  0x5c   : > { %2000 = vmatmul.mubr.msk.f32.gmra.mrb[18].mxu0 %vm290_vm0, %v237_v51  ;;  %2048 = vmatmul.mubr.msk.f32.gmra.mrb[18].mxu1 %vm290_vm0, %v269_v52 }
  0x5d   : > { %2002 = vmatprep.mubr.msk.f32.mxu0 %vm290_vm0, %v238_v53  ;;  %2050 = vmatprep.mubr.msk.f32.mxu1 %vm290_vm0, %v270_v54 }
  0x60   : > { %2003 = vmatmul.mubr.msk.f32.gmra.mrb[20].mxu0 %vm290_vm0, %v239_v55  ;;  %2051 = vmatmul.mubr.msk.f32.gmra.mrb[20].mxu1 %vm290_vm0, %v271_v56 }
  0x61   : > { %2005 = vmatprep.mubr.msk.f32.mxu0 %vm290_vm0, %v240_v57  ;;  %2053 = vmatprep.mubr.msk.f32.mxu1 %vm290_vm0, %v272_v58 }
  0x64   : > { %2006 = vmatmul.mubr.msk.f32.gmra.mrb[22].mxu0 %vm290_vm0, %v241_v59  ;;  %2054 = vmatmul.mubr.msk.f32.gmra.mrb[22].mxu1 %vm290_vm0, %v273_v60 }
  0x65   : > { %2008 = vmatprep.mubr.msk.f32.mxu0 %vm290_vm0, %v242_v61  ;;  %2056 = vmatprep.mubr.msk.f32.mxu1 %vm290_vm0, %v274_v62 }
  0x68   : > { %2009 = vmatmul.mubr.msk.f32.gmra.mrb[24].mxu0 %vm290_vm0, %v243_v63  ;;  %2057 = vmatmul.mubr.msk.f32.gmra.mrb[24].mxu1 %vm290_vm0, %v275_v0 }
  0x69   : > { %2011 = vmatprep.mubr.msk.f32.mxu0 %vm290_vm0, %v244_v1  ;;  %2059 = vmatprep.mubr.msk.f32.mxu1 %vm290_vm0, %v276_v2 }
  0x6c   : > { %2012 = vmatmul.mubr.msk.f32.gmra.mrb[26].mxu0 %vm290_vm0, %v245_v3  ;;  %2060 = vmatmul.mubr.msk.f32.gmra.mrb[26].mxu1 %vm290_vm0, %v277_v4 }
  0x6d   : > { %2014 = vmatprep.mubr.msk.f32.mxu0 %vm290_vm0, %v246_v5  ;;  %2062 = vmatprep.mubr.msk.f32.mxu1 %vm290_vm0, %v278_v6 }
  0x70   : > { %2015 = vmatmul.mubr.msk.f32.gmra.mrb[28].mxu0 %vm290_vm0, %v247_v7  ;;  %2063 = vmatmul.mubr.msk.f32.gmra.mrb[28].mxu1 %vm290_vm0, %v279_v8 }
  0x71   : > { %2017 = vmatprep.mubr.msk.f32.mxu0 %vm290_vm0, %v248_v9  ;;  %2065 = vmatprep.mubr.msk.f32.mxu1 %vm290_vm0, %v280_v10 }
  0x74   : > { %2018 = vmatmul.mubr.msk.f32.gmra.mrb[30].mxu0 %vm290_vm0, %v249_v11  ;;  %2066 = vmatmul.mubr.msk.f32.gmra.mrb[30].mxu1 %vm290_vm0, %v281_v12 }
 0x10b   : > { %v2518_v13 = vpop.f32.mrb[0].mxu0  ;;  %v2520_v14 = vpop.f32.mrb[0].mxu1 }
 0x10c   : > { %3528 = vst [vmem:[#allocation7_spill] sm:$0xff] %v2518_v13  ;;  %3529 = vst [vmem:[#allocation8_spill] sm:$0xff] %v2520_v14  ;;  %v2522_v15 = vpop.f32.mrb[1].mxu0  ;;  %v2524_v16 = vpop.f32.mrb[1].mxu1 }
 0x10d   : > { %3530 = vst [vmem:[#allocation9_spill] sm:$0xff] %v2522_v15  ;;  %3531 = vst [vmem:[#allocation10_spill] sm:$0xff] %v2524_v16 }
 0x10f   : > { %v2526_v17 = vpop.f32.mrb[2].mxu0  ;;  %v2528_v18 = vpop.f32.mrb[2].mxu1 }
 0x110   : > { %3532 = vst [vmem:[#allocation11_spill] sm:$0xff] %v2526_v17  ;;  %3533 = vst [vmem:[#allocation12_spill] sm:$0xff] %v2528_v18  ;;  %v2530_v19 = vpop.f32.mrb[3].mxu0  ;;  %v2532_v20 = vpop.f32.mrb[3].mxu1 }
 0x111   : > { %3534 = vst [vmem:[#allocation13_spill] sm:$0xff] %v2530_v19  ;;  %3535 = vst [vmem:[#allocation14_spill] sm:$0xff] %v2532_v20 }
 0x113   : > { %v2534_v21 = vpop.f32.mrb[4].mxu0  ;;  %v2536_v22 = vpop.f32.mrb[4].mxu1 }
 0x114   : > { %3536 = vst [vmem:[#allocation15_spill] sm:$0xff] %v2534_v21  ;;  %3537 = vst [vmem:[#allocation16_spill] sm:$0xff] %v2536_v22  ;;  %v2538_v23 = vpop.f32.mrb[5].mxu0  ;;  %v2540_v24 = vpop.f32.mrb[5].mxu1 }
 0x115   : > { %3538 = vst [vmem:[#allocation17_spill] sm:$0xff] %v2538_v23  ;;  %3539 = vst [vmem:[#allocation18_spill] sm:$0xff] %v2540_v24 }
 0x117   : > { %v2542_v25 = vpop.f32.mrb[6].mxu0  ;;  %v2544_v26 = vpop.f32.mrb[6].mxu1 }
 0x118   : > { %3540 = vst [vmem:[#allocation19_spill] sm:$0xff] %v2542_v25  ;;  %3541 = vst [vmem:[#allocation20_spill] sm:$0xff] %v2544_v26  ;;  %v2546_v27 = vpop.f32.mrb[7].mxu0  ;;  %v2548_v28 = vpop.f32.mrb[7].mxu1 }
 0x119   : > { %3542 = vst [vmem:[#allocation21_spill] sm:$0xff] %v2546_v27  ;;  %3543 = vst [vmem:[#allocation22_spill] sm:$0xff] %v2548_v28 }
 0x11b   : > { %v2550_v29 = vpop.f32.mrb[8].mxu0  ;;  %v2552_v30 = vpop.f32.mrb[8].mxu1 }
 0x11c   : > { %3544 = vst [vmem:[#allocation23_spill] sm:$0xff] %v2550_v29  ;;  %3545 = vst [vmem:[#allocation24_spill] sm:$0xff] %v2552_v30  ;;  %v2554_v31 = vpop.f32.mrb[9].mxu0  ;;  %v2556_v32 = vpop.f32.mrb[9].mxu1 }
 0x11d   : > { %3546 = vst [vmem:[#allocation25_spill] sm:$0xff] %v2554_v31  ;;  %3547 = vst [vmem:[#allocation26_spill] sm:$0xff] %v2556_v32 }
 0x11f   : > { %v2558_v33 = vpop.f32.mrb[10].mxu0  ;;  %v2560_v34 = vpop.f32.mrb[10].mxu1 }
 0x120   : > { %3548 = vst [vmem:[#allocation27_spill] sm:$0xff] %v2560_v34  ;;  %v2562_v35 = vpop.f32.mrb[11].mxu0  ;;  %v2564_v36 = vpop.f32.mrb[11].mxu1 }
 0x121   : > { %3549 = vst [vmem:[#allocation28_spill] sm:$0xff] %v2562_v35  ;;  %3550 = vst [vmem:[#allocation29_spill] sm:$0xff] %v2564_v36 }
 0x123   : > { %v2566_v37 = vpop.f32.mrb[12].mxu0  ;;  %v2568_v38 = vpop.f32.mrb[12].mxu1 }
 0x124   : > { %3551 = vst [vmem:[#allocation30_spill] sm:$0xff] %v2568_v38  ;;  %v2570_v39 = vpop.f32.mrb[13].mxu0  ;;  %v2572_v40 = vpop.f32.mrb[13].mxu1 }
 0x125   : > { %3552 = vst [vmem:[#allocation31_spill] sm:$0xff] %v2572_v40 }
 0x127   : > { %v2574_v41 = vpop.f32.mrb[14].mxu0  ;;  %v2576_v42 = vpop.f32.mrb[14].mxu1 }
 0x128   : > { %3553 = vst [vmem:[#allocation32_spill] sm:$0xff] %v2576_v42  ;;  %v2578_v43 = vpop.f32.mrb[15].mxu0  ;;  %v2580_v44 = vpop.f32.mrb[15].mxu1 }
 0x129   : > { %3554 = vst [vmem:[#allocation33_spill] sm:$0xff] %v2580_v44 }
 0x12b   : > { %v2582_v45 = vpop.f32.mrb[16].mxu0  ;;  %v2584_v46 = vpop.f32.mrb[16].mxu1 }
 0x12c   : > { %3555 = vst [vmem:[#allocation34_spill] sm:$0xff] %v2584_v46  ;;  %v2586_v47 = vpop.f32.mrb[17].mxu0  ;;  %v2588_v48 = vpop.f32.mrb[17].mxu1 }
 0x12d   : > { %3556 = vst [vmem:[#allocation35_spill] sm:$0xff] %v2588_v48 }
 0x12f   : > { %v2590_v49 = vpop.f32.mrb[18].mxu0  ;;  %v2592_v50 = vpop.f32.mrb[18].mxu1 }
 0x130   : > { %3557 = vst [vmem:[#allocation36_spill] sm:$0xff] %v2592_v50  ;;  %v2594_v51 = vpop.f32.mrb[19].mxu0  ;;  %v2596_v52 = vpop.f32.mrb[19].mxu1 }
 0x131   : > { %3558 = vst [vmem:[#allocation37_spill] sm:$0xff] %v2596_v52 }
 0x133   : > { %v2598_v53 = vpop.f32.mrb[20].mxu0  ;;  %v2600_v54 = vpop.f32.mrb[20].mxu1 }
 0x134   : > { %3559 = vst [vmem:[#allocation38_spill] sm:$0xff] %v2598_v53  ;;  %3560 = vst [vmem:[#allocation39_spill] sm:$0xff] %v2600_v54  ;;  %v2602_v55 = vpop.f32.mrb[21].mxu0  ;;  %v2604_v56 = vpop.f32.mrb[21].mxu1 }
 0x135   : > { %3561 = vst [vmem:[#allocation40_spill] sm:$0xff] %v2604_v56 }
 0x137   : > { %v2606_v57 = vpop.f32.mrb[22].mxu0  ;;  %v2608_v58 = vpop.f32.mrb[22].mxu1 }
 0x138   : > { %3562 = vst [vmem:[#allocation41_spill] sm:$0xff] %v2606_v57  ;;  %3563 = vst [vmem:[#allocation42_spill] sm:$0xff] %v2608_v58  ;;  %v2610_v59 = vpop.f32.mrb[23].mxu0  ;;  %v2612_v60 = vpop.f32.mrb[23].mxu1 }
 0x139   : > { %3564 = vst [vmem:[#allocation43_spill] sm:$0xff] %v2610_v59  ;;  %3565 = vst [vmem:[#allocation44_spill] sm:$0xff] %v2612_v60 }
 0x13b   : > { %v2614_v61 = vpop.f32.mrb[24].mxu0  ;;  %v2616_v62 = vpop.f32.mrb[24].mxu1 }
 0x13c   : > { %3566 = vst [vmem:[#allocation45_spill] sm:$0xff] %v2614_v61  ;;  %3567 = vst [vmem:[#allocation46_spill] sm:$0xff] %v2616_v62  ;;  %v2618_v63 = vpop.f32.mrb[25].mxu0  ;;  %v2620_v0 = vpop.f32.mrb[25].mxu1 }
 0x13d   : > { %3568 = vst [vmem:[#allocation47_spill] sm:$0xff] %v2618_v63  ;;  %3569 = vst [vmem:[#allocation48_spill] sm:$0xff] %v2620_v0 }
 0x13f   : > { %v2622_v1 = vpop.f32.mrb[26].mxu0  ;;  %v2624_v2 = vpop.f32.mrb[26].mxu1 }
 0x140   : > { %3570 = vst [vmem:[#allocation49_spill] sm:$0xff] %v2622_v1  ;;  %3571 = vst [vmem:[#allocation50_spill] sm:$0xff] %v2624_v2  ;;  %v2626_v3 = vpop.f32.mrb[27].mxu0  ;;  %v2628_v4 = vpop.f32.mrb[27].mxu1 }
 0x141   : > { %3572 = vst [vmem:[#allocation51_spill] sm:$0xff] %v2626_v3  ;;  %3573 = vst [vmem:[#allocation52_spill] sm:$0xff] %v2628_v4 }
 0x143   : > { %v2630_v5 = vpop.f32.mrb[28].mxu0  ;;  %v2632_v6 = vpop.f32.mrb[28].mxu1  ;;  %870 = sbr.rel (%p1871_p2) target bundleno = 508 (0x1fc), region = 36 }
 0x144   : > { %3574 = vst [vmem:[#allocation53_spill] sm:$0xff] %v2630_v5  ;;  %3575 = vst [vmem:[#allocation54_spill] sm:$0xff] %v2632_v6  ;;  %v2634_v7 = vpop.f32.mrb[29].mxu0  ;;  %v2636_v8 = vpop.f32.mrb[29].mxu1 }
 0x145   : > { %3576 = vst [vmem:[#allocation55_spill] sm:$0xff] %v2634_v7  ;;  %3577 = vst [vmem:[#allocation56_spill] sm:$0xff] %v2636_v8 }
 0x147   : > { %v2638_v9 = vpop.f32.mrb[30].mxu0  ;;  %v2640_v10 = vpop.f32.mrb[30].mxu1 }
 0x148   : > { %3578 = vst [vmem:[#allocation57_spill] sm:$0xff] %v2638_v9  ;;  %3579 = vst [vmem:[#allocation58_spill] sm:$0xff] %v2640_v10  ;;  %v2642_v11 = vpop.f32.mrb[31].mxu0  ;;  %v2644_v12 = vpop.f32.mrb[31].mxu1 }
 0x149   : > { %3580 = vst [vmem:[#allocation59_spill] sm:$0xff] %v2642_v11  ;;  %3581 = vst [vmem:[#allocation60_spill] sm:$0xff] %v2644_v12 }
 0x14a   : > { %v871_v2 = vlaneseq  ;;  %s1872_s6 = sshll.u32 %s2245_s12, 9 }
 0x14b   : > { %v2653_v0 = vstv %s1872_s6 }
 0x14c   : > { %v2648_v4 = vshrl.u32 %v871_v2, 7 }
 0x14e   : > { %v905_v6 = vadd.s32 264, %v2648_v4  ;;  %v906_v8 = vadd.s32 272, %v2648_v4  ;;  %v907_v62 = vadd.s32 280, %v2648_v4  ;;  %v908_v10 = vadd.s32 288, %v2648_v4 }
 0x14f   : > { %v909_v12 = vadd.s32 296, %v2648_v4  ;;  %v910_v58 = vadd.s32 304, %v2648_v4  ;;  %v911_v60 = vadd.s32 312, %v2648_v4  ;;  %v912_v54 = vadd.s32 320, %v2648_v4 }
 0x150   : > { %v913_v2 = vadd.s32 328, %v2648_v4  ;;  %v914_v56 = vadd.s32 336, %v2648_v4  ;;  %v915_v50 = vadd.s32 344, %v2648_v4  ;;  %v916_v52 = vadd.s32 352, %v2648_v4 }
 0x151   : > { %v917_v46 = vadd.s32 360, %v2648_v4  ;;  %v918_v48 = vadd.s32 368, %v2648_v4  ;;  %v919_v42 = vadd.s32 376, %v2648_v4  ;;  %v920_v44 = vadd.s32 384, %v2648_v4 }
 0x152   : > { %v921_v38 = vadd.s32 392, %v2648_v4  ;;  %v922_v40 = vadd.s32 400, %v2648_v4  ;;  %v923_v34 = vadd.s32 408, %v2648_v4  ;;  %v924_v36 = vadd.s32 416, %v2648_v4 }
 0x153   : > { %v925_v30 = vadd.s32 424, %v2648_v4  ;;  %v926_v32 = vadd.s32 432, %v2648_v4  ;;  %v927_v26 = vadd.s32 440, %v2648_v4  ;;  %v928_v28 = vadd.s32 448, %v2648_v4 }
 0x154   : > { %v929_v22 = vadd.s32 456, %v2648_v4  ;;  %v930_v24 = vadd.s32 464, %v2648_v4  ;;  %v931_v18 = vadd.s32 472, %v2648_v4  ;;  %v932_v20 = vadd.s32 480, %v2648_v4 }
 0x155   : > { %v933_v14 = vadd.s32 488, %v2648_v4  ;;  %v934_v16 = vadd.s32 496, %v2648_v4  ;;  %v935_v9 = vadd.s32 504, %v2648_v4  ;;  %v2684_v11 = vadd.s32 %v2653_v0, %v905_v6 }
 0x156   : > { %v2687_v5 = vadd.s32 %v2653_v0, %v906_v8  ;;  %v2690_v7 = vadd.s32 %v2653_v0, %v907_v62  ;;  %v2693_v1 = vadd.s32 %v2653_v0, %v908_v10  ;;  %v2696_v3 = vadd.s32 %v2653_v0, %v909_v12 }
 0x157   : > { %v2699_v61 = vadd.s32 %v2653_v0, %v910_v58  ;;  %v2702_v63 = vadd.s32 %v2653_v0, %v911_v60  ;;  %v2705_v6 = vadd.s32 %v2653_v0, %v912_v54  ;;  %v2708_v8 = vadd.s32 %v2653_v0, %v913_v2 }
 0x158   : > { %v2711_v62 = vadd.s32 %v2653_v0, %v914_v56  ;;  %v2714_v10 = vadd.s32 %v2653_v0, %v915_v50  ;;  %v2717_v12 = vadd.s32 %v2653_v0, %v916_v52  ;;  %v2720_v58 = vadd.s32 %v2653_v0, %v917_v46 }
 0x159   : > { %v2723_v60 = vadd.s32 %v2653_v0, %v918_v48  ;;  %v2726_v54 = vadd.s32 %v2653_v0, %v919_v42  ;;  %v2729_v2 = vadd.s32 %v2653_v0, %v920_v44  ;;  %v2732_v56 = vadd.s32 %v2653_v0, %v921_v38 }
 0x15a   : > { %v2735_v50 = vadd.s32 %v2653_v0, %v922_v40  ;;  %v2738_v52 = vadd.s32 %v2653_v0, %v923_v34  ;;  %v2741_v46 = vadd.s32 %v2653_v0, %v924_v36  ;;  %v2744_v48 = vadd.s32 %v2653_v0, %v925_v30 }
 0x15b   : > { %v2747_v42 = vadd.s32 %v2653_v0, %v926_v32  ;;  %v2750_v44 = vadd.s32 %v2653_v0, %v927_v26  ;;  %v2753_v38 = vadd.s32 %v2653_v0, %v928_v28  ;;  %v2756_v40 = vadd.s32 %v2653_v0, %v929_v22 }
 0x15c   : > { %3582 = vst [vmem:[#allocation61_spill] sm:$0xff] %v2744_v48  ;;  %v2759_v34 = vadd.s32 %v2653_v0, %v930_v24  ;;  %v2762_v36 = vadd.s32 %v2653_v0, %v931_v18  ;;  %v2765_v30 = vadd.s32 %v2653_v0, %v932_v20  ;;  %v2768_v32 = vadd.s32 %v2653_v0, %v933_v14 }
 0x15d   : > { %3583 = vst [vmem:[#allocation62_spill] sm:$0xff] %v2747_v42  ;;  %3584 = vst [vmem:[#allocation63_spill] sm:$0xff] %v2750_v44  ;;  %v2771_v26 = vadd.s32 %v2653_v0, %v934_v16  ;;  %v2774_v28 = vadd.s32 %v2653_v0, %v935_v9  ;;  %v873_v22 = vadd.s32 8, %v2648_v4  ;;  %v874_v24 = vadd.s32 16, %v2648_v4 }
 0x15e   : > { %3585 = vst [vmem:[#allocation64_spill] sm:$0xff] %v2753_v38  ;;  %3586 = vst [vmem:[#allocation65_spill] sm:$0xff] %v2756_v40  ;;  %v938_v18 = vadd.s32 %v2653_v0, %v2648_v4  ;;  %v876_v14 = vadd.s32 32, %v2648_v4  ;;  %v877_v16 = vadd.s32 40, %v2648_v4 }
 0x15f   : > { %3587 = vst [vmem:[#allocation66_spill] sm:$0xff] %v2759_v34  ;;  %3588 = vst [vmem:[#allocation67_spill] sm:$0xff] %v2762_v36  ;;  %v875_v34 = vadd.s32 24, %v2648_v4  ;;  %v939_v20 = vadd.s32 %v2653_v0, %v873_v22  ;;  %v879_v22 = vadd.s32 56, %v2648_v4 }
 0x160   : > { %3589 = vst [vmem:[#allocation68_spill] sm:$0xff] %v2765_v30  ;;  %3590 = vst [vmem:[#allocation69_spill] sm:$0xff] %v2768_v32  ;;  %v940_v32 = vadd.s32 %v2653_v0, %v874_v24  ;;  %vm1002_vm1 = vcmp.lt.s32.totalorder %v938_v18, 1000  ;;  %v943_v40 = vadd.s32 %v2653_v0, %v877_v16 }
 0x161   : > { %3591 = vst [vmem:[#allocation70_spill] sm:$0xff] %v2771_v26  ;;  %3592 = vst [vmem:[#allocation71_spill] sm:$0xff] %v2774_v28  ;;  %v941_v9 = vadd.s32 %v2653_v0, %v875_v34  ;;  %vm1003_vm2 = vcmp.lt.s32.totalorder %v939_v20, 1000  ;;  %v878_v28 = vadd.s32 48, %v2648_v4  ;;  %v942_v26 = vadd.s32 %v2653_v0, %v876_v14 }
 0x162   : > { %vm1004_vm3 = vcmp.lt.s32.totalorder %v940_v32, 1000  ;;  %v1066_v30 = vsel %vm1002_vm1, %v2522_v15, 0.0  ;;  %v1067_v36 = vsel %vm1003_vm2, %v2518_v13, 0.0  ;;  %v880_v34 = vadd.s32 64, %v2648_v4 }
 0x163   : > { %vm1005_vm4 = vcmp.lt.s32.totalorder %v941_v9, 1000  ;;  %v1131_v24 = vadd.f32 %v1067_v36, %v1066_v30  ;;  %v1068_v38 = vsel %vm1004_vm3, %v2530_v19, 0.0  ;;  %v944_v18 = vadd.s32 %v2653_v0, %v878_v28 }
 0x164   : > { %vm1006_vm5 = vcmp.lt.s32.totalorder %v942_v26, 1000  ;;  %v1069_v32 = vsel %vm1005_vm4, %v2526_v17, 0.0  ;;  %v881_v14 = vadd.s32 72, %v2648_v4  ;;  %v945_v13 = vadd.s32 %v2653_v0, %v879_v22 }
 0x165   : > { %v1132_v20 = vadd.f32 %v1131_v24, %v1068_v38  ;;  %vm1007_vm6 = vcmp.lt.s32.totalorder %v943_v40, 1000  ;;  %v1070_v16 = vsel %vm1006_vm5, %v2538_v23, 0.0  ;;  %v882_v9 = vadd.s32 80, %v2648_v4 }
 0x166   : > { %v946_v19 = vadd.s32 %v2653_v0, %v880_v34  ;;  %vm1008_vm7 = vcmp.lt.s32.totalorder %v944_v18, 1000  ;;  %v1071_v28 = vsel %vm1007_vm6, %v2534_v21, 0.0  ;;  %v883_v26 = vadd.s32 88, %v2648_v4 }
 0x167   : > { %v1133_v15 = vadd.f32 %v1132_v20, %v1069_v32  ;;  %v947_v24 = vadd.s32 %v2653_v0, %v881_v14  ;;  %vm1009_vm8 = vcmp.lt.s32.totalorder %v945_v13, 1000  ;;  %v1072_v22 = vsel %vm1008_vm7, %v2546_v27, 0.0 }
 0x168   : > { %v884_v40 = vadd.s32 96, %v2648_v4  ;;  %v948_v20 = vadd.s32 %v2653_v0, %v882_v9  ;;  %vm1010_vm9 = vcmp.lt.s32.totalorder %v946_v19, 1000  ;;  %v1073_v34 = vsel %vm1009_vm8, %v2542_v25, 0.0 }
 0x169   : > { %v1134_v44 = vadd.f32 %v1133_v15, %v1070_v16  ;;  %v885_v15 = vadd.s32 104, %v2648_v4  ;;  %v949_v18 = vadd.s32 %v2653_v0, %v883_v26  ;;  %vm1011_vm10 = vcmp.lt.s32.totalorder %v947_v24, 1000 }
 0x16a   : > { %v1074_v14 = vsel %vm1010_vm9, %v2554_v31, 0.0  ;;  %v886_v13 = vadd.s32 112, %v2648_v4  ;;  %vm1012_vm11 = vcmp.lt.s32.totalorder %v948_v20, 1000  ;;  %v1075_v9 = vsel %vm1011_vm10, %v2550_v29, 0.0 }
 0x16b   : > { %v1135_v17 = vadd.f32 %v1134_v44, %v1071_v28  ;;  %v950_v44 = vadd.s32 %v2653_v0, %v884_v40  ;;  %v1203_v19 = vmul.f32 %v1066_v30, %v1066_v30  ;;  %v887_v25 = vadd.s32 120, %v2648_v4 }
 0x16c   : > { %v951_v42 = vadd.s32 %v2653_v0, %v885_v15  ;;  %vm1013_vm12 = vcmp.lt.s32.totalorder %v949_v18, 1000  ;;  %v1205_v24 = vmul.f32 %v1068_v38, %v1068_v38  ;;  %v888_v31 = vadd.s32 128, %v2648_v4 }
 0x16d   : > { %v1136_v23 = vadd.f32 %v1135_v17, %v1072_v22  ;;  %v1204_v17 = vmul.f32 %v1067_v36, %v1067_v36  ;;  %v952_v48 = vadd.s32 %v2653_v0, %v886_v13  ;;  %vm1014_vm13 = vcmp.lt.s32.totalorder %v950_v44, 1000 }
 0x16e   : > { %v1206_v20 = vmul.f32 %v1069_v32, %v1069_v32  ;;  %v889_v36 = vadd.s32 136, %v2648_v4  ;;  %v953_v29 = vadd.s32 %v2653_v0, %v887_v25  ;;  %vm1015_vm14 = vcmp.lt.s32.totalorder %v951_v42, 1000 }
 0x16f   : > { %v1137_v21 = vadd.f32 %v1136_v23, %v1073_v34  ;;  %v1076_v23 = vsel %vm1012_vm11, %v2562_v35, 0.0  ;;  %v1267_v30 = vadd.f32 %v1204_v17, %v1203_v19  ;;  %v1207_v18 = vmul.f32 %v1070_v16, %v1070_v16 }
 0x170   : > { %v890_v35 = vadd.s32 144, %v2648_v4  ;;  %v954_v13 = vadd.s32 %v2653_v0, %v888_v31  ;;  %vm1016_vm15 = vcmp.lt.s32.totalorder %v952_v48, 1000  ;;  %v1208_v32 = vmul.f32 %v1071_v28, %v1071_v28 }
 0x171   : > { %v1138_v27 = vadd.f32 %v1137_v21, %v1074_v14  ;;  %v1077_v21 = vsel %vm1013_vm12, %v2558_v33, 0.0  ;;  %v1268_v38 = vadd.f32 %v1267_v30, %v1205_v24  ;;  %v891_v17 = vadd.s32 152, %v2648_v4 }
 0x172   : > { %v955_v25 = vadd.s32 %v2653_v0, %v889_v36  ;;  %vm1017_vm0 = vcmp.lt.s32.totalorder %v953_v29, 1000  ;;  %v1209_v16 = vmul.f32 %v1072_v22, %v1072_v22  ;;  %v892_v30 = vadd.s32 160, %v2648_v4 }
 0x173   : > { %v1139_v26 = vadd.f32 %v1138_v27, %v1075_v9  ;;  %v1078_v27 = vsel %vm1014_vm13, %v2570_v39, 0.0  ;;  %v1269_v19 = vadd.f32 %v1268_v38, %v1206_v20  ;;  %v956_v31 = vadd.s32 %v2653_v0, %v890_v35 }
 0x174   : > { %vm1018_vm1 = vcmp.lt.s32.totalorder %v954_v13, 1000  ;;  %v1210_v28 = vmul.f32 %v1073_v34, %v1073_v34  ;;  %v893_v38 = vadd.s32 168, %v2648_v4  ;;  %v957_v36 = vadd.s32 %v2653_v0, %v891_v17 }
 0x175   : > { %v1140_v40 = vadd.f32 %v1139_v26, %v1076_v23  ;;  %v1079_v26 = vsel %vm1015_vm14, %v2566_v37, 0.0  ;;  %v1270_v24 = vadd.f32 %v1269_v19, %v1207_v18  ;;  %vm1019_vm2 = vcmp.lt.s32.totalorder %v955_v25, 1000 }
 0x176   : > { %v1211_v22 = vmul.f32 %v1074_v14, %v1074_v14  ;;  %v894_v19 = vadd.s32 176, %v2648_v4  ;;  %v958_v35 = vadd.s32 %v2653_v0, %v892_v30  ;;  %vm1020_vm3 = vcmp.lt.s32.totalorder %v956_v31, 1000 }
 0x177   : > { %v1141_v15 = vadd.f32 %v1140_v40, %v1077_v21  ;;  %v1080_v40 = vsel %vm1016_vm15, %v2578_v43, 0.0  ;;  %v1271_v20 = vadd.f32 %v1270_v24, %v1208_v32  ;;  %v1212_v34 = vmul.f32 %v1075_v9, %v1075_v9 }
 0x178   : > { %v895_v24 = vadd.s32 184, %v2648_v4  ;;  %v959_v17 = vadd.s32 %v2653_v0, %v893_v38  ;;  %vm1021_vm4 = vcmp.lt.s32.totalorder %v957_v36, 1000  ;;  %v1213_v14 = vmul.f32 %v1076_v23, %v1076_v23 }
 0x179   : > { %v1142_v44 = vadd.f32 %v1141_v15, %v1078_v27  ;;  %v1081_v15 = vsel %vm1017_vm0, %v2574_v41, 0.0  ;;  %v1272_v18 = vadd.f32 %v1271_v20, %v1209_v16  ;;  %v896_v20 = vadd.s32 192, %v2648_v4 }
 0x17a   : > { %v960_v30 = vadd.s32 %v2653_v0, %v894_v19  ;;  %vm1022_vm5 = vcmp.lt.s32.totalorder %v958_v35, 1000  ;;  %v1214_v9 = vmul.f32 %v1077_v21, %v1077_v21  ;;  %v961_v38 = vadd.s32 %v2653_v0, %v895_v24 }
 0x17b   : > { %v1143_v42 = vadd.f32 %v1142_v44, %v1079_v26  ;;  %v1082_v44 = vsel %vm1018_vm1, %v2586_v47, 0.0  ;;  %v1273_v32 = vadd.f32 %v1272_v18, %v1210_v28  ;;  %v897_v18 = vadd.s32 200, %v2648_v4 }
 0x17c   : > { %vm1023_vm6 = vcmp.lt.s32.totalorder %v959_v17, 1000  ;;  %v1215_v23 = vmul.f32 %v1078_v27, %v1078_v27  ;;  %v962_v19 = vadd.s32 %v2653_v0, %v896_v20  ;;  %vm1024_vm7 = vcmp.lt.s32.totalorder %v960_v30, 1000 }
 0x17d   : > { %v1144_v48 = vadd.f32 %v1143_v42, %v1080_v40  ;;  %v1083_v42 = vsel %vm1019_vm2, %v2582_v45, 0.0  ;;  %v1274_v16 = vadd.f32 %v1273_v32, %v1211_v22  ;;  %v898_v32 = vadd.s32 208, %v2648_v4 }
 0x17e   : > { %v1216_v21 = vmul.f32 %v1079_v26, %v1079_v26  ;;  %v963_v24 = vadd.s32 %v2653_v0, %v897_v18  ;;  %vm1025_vm8 = vcmp.lt.s32.totalorder %v961_v38, 1000  ;;  %v1217_v27 = vmul.f32 %v1080_v40, %v1080_v40 }
 0x17f   : > { %v1145_v29 = vadd.f32 %v1144_v48, %v1081_v15  ;;  %v1084_v48 = vsel %vm1020_vm3, %v2594_v51, 0.0  ;;  %v1275_v28 = vadd.f32 %v1274_v16, %v1212_v34  ;;  %v899_v16 = vadd.s32 216, %v2648_v4 }
 0x180   : > { %v964_v20 = vadd.s32 %v2653_v0, %v898_v32  ;;  %vm1026_vm9 = vcmp.lt.s32.totalorder %v962_v19, 1000  ;;  %v1218_v26 = vmul.f32 %v1081_v15, %v1081_v15  ;;  %vm1027_vm10 = vcmp.lt.s32.totalorder %v963_v24, 1000 }
 0x181   : > { %v1146_v13 = vadd.f32 %v1145_v29, %v1082_v44  ;;  %v1085_v29 = vsel %vm1021_vm4, %v2590_v49, 0.0  ;;  %v1276_v22 = vadd.f32 %v1275_v28, %v1213_v14  ;;  %v900_v28 = vadd.s32 224, %v2648_v4 }
 0x182   : > { %v965_v18 = vadd.s32 %v2653_v0, %v899_v16  ;;  %v1219_v40 = vmul.f32 %v1082_v44, %v1082_v44  ;;  %vm1028_vm11 = vcmp.lt.s32.totalorder %v964_v20, 1000  ;;  %v1220_v15 = vmul.f32 %v1083_v42, %v1083_v42 }
 0x183   : > { %v1147_v25 = vadd.f32 %v1146_v13, %v1083_v42  ;;  %v1086_v13 = vsel %vm1022_vm5, %v2602_v55, 0.0  ;;  %v1277_v34 = vadd.f32 %v1276_v22, %v1214_v9  ;;  %v901_v22 = vadd.s32 232, %v2648_v4 }
 0x184   : > { %v966_v32 = vadd.s32 %v2653_v0, %v900_v28  ;;  %vm1029_vm12 = vcmp.lt.s32.totalorder %v965_v18, 1000  ;;  %v1221_v44 = vmul.f32 %v1084_v48, %v1084_v48  ;;  %v1222_v42 = vmul.f32 %v1085_v29, %v1085_v29  ;;  %v3597_v18 = vld [vmem:[#allocation55_spill] sm:$0xff] }
 0x185   : > { %v1148_v31 = vadd.f32 %v1147_v25, %v1084_v48  ;;  %v1087_v25 = vsel %vm1023_vm6, %v2598_v53, 0.0  ;;  %v1278_v14 = vadd.f32 %v1277_v34, %v1215_v23  ;;  %v902_v34 = vadd.s32 240, %v2648_v4 }
 0x186   : > { %v967_v16 = vadd.s32 %v2653_v0, %v901_v22  ;;  %vm1030_vm13 = vcmp.lt.s32.totalorder %v966_v32, 1000  ;;  %v1223_v53 = vmul.f32 %v1086_v13, %v1086_v13  ;;  %v1224_v32 = vmul.f32 %v1087_v25, %v1087_v25 }
 0x187   : > { %v1149_v36 = vadd.f32 %v1148_v31, %v1085_v29  ;;  %v1088_v31 = vsel %vm1024_vm7, %v2610_v59, 0.0  ;;  %v1279_v9 = vadd.f32 %v1278_v14, %v1216_v21  ;;  %v903_v14 = vadd.s32 248, %v2648_v4  ;;  %v3599_v29 = vld [vmem:[#allocation59_spill] sm:$0xff] }
 0x188   : > { %v968_v28 = vadd.s32 %v2653_v0, %v902_v34  ;;  %vm1031_vm14 = vcmp.lt.s32.totalorder %v967_v16, 1000  ;;  %vm1035_vm2 = vcmp.lt.s32.totalorder %v2684_v11, 1000  ;;  %vm1036_vm3 = vcmp.lt.s32.totalorder %v2687_v5, 1000 }
 0x189   : > { %v1150_v35 = vadd.f32 %v1149_v36, %v1086_v13  ;;  %v1089_v36 = vsel %vm1025_vm8, %v2606_v57, 0.0  ;;  %v1280_v23 = vadd.f32 %v1279_v9, %v1217_v27  ;;  %v904_v9 = vadd.s32 256, %v2648_v4 }
 0x18a   : > { %vm1032_vm15 = vcmp.lt.s32.totalorder %v968_v28, 1000  ;;  %v1226_v13 = vmul.f32 %v1089_v36, %v1089_v36  ;;  %vm1037_vm4 = vcmp.lt.s32.totalorder %v2690_v7, 1000  ;;  %vm1038_vm5 = vcmp.lt.s32.totalorder %v2693_v1, 1000 }
 0x18b   : > { %v1151_v17 = vadd.f32 %v1150_v35, %v1087_v25  ;;  %v3593_v35 = vld [vmem:[#allocation47_spill] sm:$0xff]  ;;  %v1281_v21 = vadd.f32 %v1280_v23, %v1218_v26  ;;  %v969_v23 = vadd.s32 %v2653_v0, %v903_v14  ;;  %v970_v48 = vadd.s32 %v2653_v0, %v904_v9  ;;  %v3601_v9 = vld [vmem:[#allocation10_spill] sm:$0xff] }
 0x18c   : > { %v1090_v59 = vsel %vm1026_vm9, %v3593_v35, 0.0  ;;  %vm1039_vm6 = vcmp.lt.s32.totalorder %v2696_v3, 1000  ;;  %vm1040_vm7 = vcmp.lt.s32.totalorder %v2699_v61, 1000  ;;  %vm1041_vm8 = vcmp.lt.s32.totalorder %v2702_v63, 1000 }
 0x18d   : > { %v1152_v30 = vadd.f32 %v1151_v17, %v1088_v31  ;;  %v3594_v17 = vld [vmem:[#allocation45_spill] sm:$0xff]  ;;  %v1282_v27 = vadd.f32 %v1281_v21, %v1219_v40  ;;  %vm1033_vm0 = vcmp.lt.s32.totalorder %v969_v23, 1000  ;;  %vm1034_vm1 = vcmp.lt.s32.totalorder %v970_v48, 1000  ;;  %v3602_v23 = vld [vmem:[#allocation8_spill] sm:$0xff] }
 0x18e   : > { %v1091_v57 = vsel %vm1027_vm10, %v3594_v17, 0.0  ;;  %v3598_v40 = vld [vmem:[#allocation53_spill] sm:$0xff]  ;;  %v1098_v28 = vsel %vm1034_vm1, %v3601_v9, 0.0  ;;  %vm1042_vm9 = vcmp.lt.s32.totalorder %v2705_v6, 1000  ;;  %v3608_v9 = vld [vmem:[#allocation20_spill] sm:$0xff]  ;;  %vm1043_vm10 = vcmp.lt.s32.totalorder %v2708_v8, 1000 }
 0x18f   : > { %v1153_v38 = vadd.f32 %v1152_v30, %v1089_v36  ;;  %v3595_v30 = vld [vmem:[#allocation51_spill] sm:$0xff]  ;;  %v1283_v26 = vadd.f32 %v1282_v27, %v1220_v15  ;;  %v1095_v34 = vsel %vm1031_vm14, %v3598_v40, 0.0  ;;  %v1096_v15 = vsel %vm1032_vm15, %v3599_v29, 0.0  ;;  %v3604_v40 = vld [vmem:[#allocation12_spill] sm:$0xff] }
 0x190   : > { %v1092_v35 = vsel %vm1028_vm11, %v3595_v30, 0.0  ;;  %v1225_v27 = vmul.f32 %v1088_v31, %v1088_v31  ;;  %v1228_v31 = vmul.f32 %v1091_v57, %v1091_v57  ;;  %vm1044_vm11 = vcmp.lt.s32.totalorder %v2711_v62, 1000 }
 0x191   : > { %v1154_v19 = vadd.f32 %v1153_v38, %v1090_v59  ;;  %v3596_v38 = vld [vmem:[#allocation49_spill] sm:$0xff]  ;;  %v1284_v30 = vadd.f32 %v1283_v26, %v1221_v44  ;;  %v1227_v26 = vmul.f32 %v1090_v59, %v1090_v59  ;;  %v1229_v48 = vmul.f32 %v1092_v35, %v1092_v35 }
 0x192   : > { %v1093_v17 = vsel %vm1029_vm12, %v3596_v38, 0.0  ;;  %v1101_v59 = vsel %vm1037_vm4, %v3604_v40, 0.0  ;;  %vm1045_vm12 = vcmp.lt.s32.totalorder %v2714_v10, 1000  ;;  %v3612_v40 = vld [vmem:[#allocation27_spill] sm:$0xff]  ;;  %vm1047_vm14 = vcmp.lt.s32.totalorder %v2720_v58, 1000 }
 0x193   : > { %v1155_v24 = vadd.f32 %v1154_v19, %v1091_v57  ;;  %v1094_v19 = vsel %vm1030_vm13, %v3597_v18, 0.0  ;;  %v1285_v21 = vadd.f32 %v1284_v30, %v1222_v42  ;;  %v3603_v30 = vld [vmem:[#allocation14_spill] sm:$0xff]  ;;  %vm1046_vm13 = vcmp.lt.s32.totalorder %v2717_v12, 1000 }
 0x194   : > { %v1100_v36 = vsel %vm1036_vm3, %v3603_v30, 0.0  ;;  %v1231_v29 = vmul.f32 %v1094_v19, %v1094_v19  ;;  %vm1048_vm15 = vcmp.lt.s32.totalorder %v2723_v60, 1000  ;;  %vm1050_vm1 = vcmp.lt.s32.totalorder %v2729_v2, 1000 }
 0x195   : > { %v1156_v20 = vadd.f32 %v1155_v24, %v1092_v35  ;;  %v1286_v14 = vadd.f32 %v1285_v21, %v1223_v53  ;;  %vm1052_vm3 = vcmp.lt.s32.totalorder %v2735_v50, 1000  ;;  %vm1053_vm4 = vcmp.lt.s32.totalorder %v2738_v52, 1000  ;;  %v3621_v50 = vld [vmem:[#allocation61_spill] sm:$0xff]  ;;  %v3623_v52 = vld [vmem:[#allocation62_spill] sm:$0xff] }
 0x197   : > { %v1157_v22 = vadd.f32 %v1156_v20, %v1093_v17  ;;  %v3600_v20 = vld [vmem:[#allocation57_spill] sm:$0xff]  ;;  %v1287_v44 = vadd.f32 %v1286_v14, %v1224_v32  ;;  %v1230_v32 = vmul.f32 %v1093_v17, %v1093_v17  ;;  %v3606_v14 = vld [vmem:[#allocation16_spill] sm:$0xff] }
 0x198   : > { %v1097_v38 = vsel %vm1033_vm0, %v3600_v20, 0.0  ;;  %v1103_v35 = vsel %vm1039_vm6, %v3606_v14, 0.0  ;;  %vm1049_vm0 = vcmp.lt.s32.totalorder %v2726_v54, 1000  ;;  %vm1055_vm6 = vcmp.lt.s32.totalorder %v3621_v50, 1000 }
 0x199   : > { %v1158_v4 = vadd.f32 %v1157_v22, %v1094_v19  ;;  %v1288_v25 = vadd.f32 %v1287_v44, %v1225_v27  ;;  %v1099_v22 = vsel %vm1035_vm2, %v3602_v23, 0.0  ;;  %v1233_v44 = vmul.f32 %v1096_v15, %v1096_v15 }
 0x19a   : > { %v1105_v19 = vsel %vm1041_vm8, %v3608_v9, 0.0  ;;  %v1235_v23 = vmul.f32 %v1098_v28, %v1098_v28  ;;  %vm1051_vm2 = vcmp.lt.s32.totalorder %v2732_v56, 1000 }
 0x19b   : > { %v1159_v24 = vadd.f32 %v1158_v4, %v1095_v34  ;;  %v1289_v53 = vadd.f32 %v1288_v25, %v1226_v13  ;;  %v3607_v13 = vld [vmem:[#allocation22_spill] sm:$0xff] }
 0x19c   : > { %v1104_v17 = vsel %vm1040_vm7, %v3607_v13, 0.0  ;;  %v3616_v13 = vld [vmem:[#allocation32_spill] sm:$0xff]  ;;  %vm1056_vm7 = vcmp.lt.s32.totalorder %v3623_v52, 1000 }
 0x19d   : > { %v1160_v16 = vadd.f32 %v1159_v24, %v1096_v15  ;;  %v1290_v4 = vadd.f32 %v1289_v53, %v1227_v26  ;;  %v3605_v24 = vld [vmem:[#allocation18_spill] sm:$0xff]  ;;  %v1234_v26 = vmul.f32 %v1097_v38, %v1097_v38  ;;  %v3610_v53 = vld [vmem:[#allocation24_spill] sm:$0xff] }
 0x19e   : > { %v1102_v57 = vsel %vm1038_vm5, %v3605_v24, 0.0  ;;  %v1107_v15 = vsel %vm1043_vm10, %v3610_v53, 0.0  ;;  %vm1054_vm5 = vcmp.lt.s32.totalorder %v2741_v46, 1000  ;;  %v3620_v53 = vld [vmem:[#allocation36_spill] sm:$0xff]  ;;  %v3625_v46 = vld [vmem:[#allocation63_spill] sm:$0xff] }
 0x19f   : > { %v1161_v0 = vadd.f32 %v1160_v16, %v1097_v38  ;;  %v1291_v21 = vadd.f32 %v1290_v4, %v1228_v31  ;;  %v1232_v16 = vmul.f32 %v1095_v34, %v1095_v34  ;;  %v1237_v4 = vmul.f32 %v1100_v36, %v1100_v36 }
 0x1a0   : > { %v1239_v24 = vmul.f32 %v1102_v57, %v1102_v57  ;;  %vm1057_vm8 = vcmp.lt.s32.totalorder %v3625_v46, 1000 }
 0x1a1   : > { %v1162_v42 = vadd.f32 %v1161_v0, %v1098_v28  ;;  %v1292_v27 = vadd.f32 %v1291_v21, %v1229_v48  ;;  %v3611_v48 = vld [vmem:[#allocation29_spill] sm:$0xff]  ;;  %v1109_v28 = vsel %vm1045_vm12, %v3612_v40, 0.0  ;;  %v3624_v40 = vld [vmem:[#allocation39_spill] sm:$0xff] }
 0x1a2   : > { %v1108_v38 = vsel %vm1044_vm11, %v3611_v48, 0.0  ;;  %v3622_v48 = vld [vmem:[#allocation40_spill] sm:$0xff] }
 0x1a3   : > { %v1163_v18 = vadd.f32 %v1162_v42, %v1099_v22  ;;  %v1293_v20 = vadd.f32 %v1292_v27, %v1230_v32  ;;  %v3609_v42 = vld [vmem:[#allocation26_spill] sm:$0xff]  ;;  %v1238_v32 = vmul.f32 %v1101_v59, %v1101_v59 }
 0x1a4   : > { %v1106_v34 = vsel %vm1042_vm9, %v3609_v42, 0.0  ;;  %v3614_v27 = vld [vmem:[#allocation30_spill] sm:$0xff] }
 0x1a5   : > { %v1164_v11 = vadd.f32 %v1163_v18, %v1100_v36  ;;  %v1294_v0 = vadd.f32 %v1293_v20, %v1231_v29  ;;  %v1236_v18 = vmul.f32 %v1099_v22, %v1099_v22  ;;  %v1111_v36 = vsel %vm1047_vm14, %v3614_v27, 0.0 }
 0x1a6   : > { %v1241_v20 = vmul.f32 %v1104_v17, %v1104_v17  ;;  %v1243_v9 = vmul.f32 %v1106_v34, %v1106_v34 }
 0x1a7   : > { %v1165_v5 = vadd.f32 %v1164_v11, %v1101_v59  ;;  %v1295_v25 = vadd.f32 %v1294_v0, %v1232_v16  ;;  %v3615_v16 = vld [vmem:[#allocation33_spill] sm:$0xff] }
 0x1a8   : > { %v1112_v59 = vsel %vm1048_vm15, %v3615_v16, 0.0  ;;  %v3629_v16 = vld [vmem:[#allocation65_spill] sm:$0xff] }
 0x1a9   : > { %v1166_v7 = vadd.f32 %v1165_v5, %v1102_v57  ;;  %v1296_v31 = vadd.f32 %v1295_v25, %v1233_v44  ;;  %v3613_v5 = vld [vmem:[#allocation31_spill] sm:$0xff]  ;;  %v1113_v57 = vsel %vm1049_vm0, %v3616_v13, 0.0  ;;  %v1242_v44 = vmul.f32 %v1105_v19, %v1105_v19  ;;  %v3618_v25 = vld [vmem:[#allocation34_spill] sm:$0xff] }
 0x1aa   : > { %v1110_v22 = vsel %vm1046_vm13, %v3613_v5, 0.0  ;;  %v3626_v5 = vld [vmem:[#allocation44_spill] sm:$0xff]  ;;  %vm1059_vm10 = vcmp.lt.s32.totalorder %v3629_v16, 1000 }
 0x1ab   : > { %v1167_v1 = vadd.f32 %v1166_v7, %v1103_v35  ;;  %v1297_v30 = vadd.f32 %v1296_v31, %v1234_v26  ;;  %v1240_v7 = vmul.f32 %v1103_v35, %v1103_v35  ;;  %v1245_v31 = vmul.f32 %v1108_v38, %v1108_v38 }
 0x1ad   : > { %v1168_v3 = vadd.f32 %v1167_v1, %v1104_v17  ;;  %v1298_v11 = vadd.f32 %v1297_v30, %v1235_v23  ;;  %v1115_v17 = vsel %vm1051_vm2, %v3618_v25, 0.0  ;;  %v3619_v23 = vld [vmem:[#allocation37_spill] sm:$0xff]  ;;  %v3634_v25 = vld [vmem:[#allocation52_spill] sm:$0xff] }
 0x1af   : > { %v1169_v61 = vadd.f32 %v1168_v3, %v1105_v19  ;;  %v1299_v21 = vadd.f32 %v1298_v11, %v1236_v18  ;;  %v3617_v3 = vld [vmem:[#allocation35_spill] sm:$0xff]  ;;  %v1116_v19 = vsel %vm1052_vm3, %v3619_v23, 0.0  ;;  %v1246_v18 = vmul.f32 %v1109_v28, %v1109_v28 }
 0x1b0   : > { %v1114_v35 = vsel %vm1050_vm1, %v3617_v3, 0.0  ;;  %v1252_v3 = vmul.f32 %v1115_v17, %v1115_v17 }
 0x1b1   : > { %v1170_v63 = vadd.f32 %v1169_v61, %v1106_v34  ;;  %v1300_v29 = vadd.f32 %v1299_v21, %v1237_v4  ;;  %v1244_v61 = vmul.f32 %v1107_v15, %v1107_v15  ;;  %v1117_v34 = vsel %vm1053_vm4, %v3620_v53, 0.0  ;;  %v3637_v53 = vld [vmem:[#allocation69_spill] sm:$0xff] }
 0x1b2   : > { %v1247_v4 = vmul.f32 %v1110_v22, %v1110_v22  ;;  %vm1063_vm14 = vcmp.lt.s32.totalorder %v3637_v53, 1000 }
 0x1b3   : > { %v1171_v6 = vadd.f32 %v1170_v63, %v1107_v15  ;;  %v1301_v14 = vadd.f32 %v1300_v29, %v1238_v32  ;;  %v1118_v15 = vsel %vm1054_vm5, %v3622_v48, 0.0  ;;  %v1248_v32 = vmul.f32 %v1111_v36, %v1111_v36  ;;  %v3639_v48 = vld [vmem:[#allocation70_spill] sm:$0xff] }
 0x1b4   : > { %v1255_v50 = vmul.f32 %v1118_v15, %v1118_v15  ;;  %vm1064_vm15 = vcmp.lt.s32.totalorder %v3639_v48, 1000 }
 0x1b5   : > { %v1172_v8 = vadd.f32 %v1171_v6, %v1108_v38  ;;  %v1302_v1 = vadd.f32 %v1301_v14, %v1239_v24  ;;  %v1119_v38 = vsel %vm1055_vm6, %v3624_v40, 0.0  ;;  %v1249_v24 = vmul.f32 %v1112_v59, %v1112_v59  ;;  %v3641_v40 = vld [vmem:[#allocation71_spill] sm:$0xff] }
 0x1b6   : > { %v1250_v14 = vmul.f32 %v1113_v57, %v1113_v57  ;;  %v1256_v52 = vmul.f32 %v1119_v38, %v1119_v38  ;;  %vm1065_vm0 = vcmp.lt.s32.totalorder %v3641_v40, 1000 }
 0x1b7   : > { %v1173_v62 = vadd.f32 %v1172_v8, %v1109_v28  ;;  %v1303_v0 = vadd.f32 %v1302_v1, %v1240_v7  ;;  %v1120_v28 = vsel %vm1056_vm7, %v3626_v5, 0.0  ;;  %v3628_v7 = vld [vmem:[#allocation42_spill] sm:$0xff]  ;;  %v3630_v1 = vld [vmem:[#allocation48_spill] sm:$0xff] }
 0x1b8   : > { %v1257_v46 = vmul.f32 %v1120_v28, %v1120_v28 }
 0x1b9   : > { %v1174_v10 = vadd.f32 %v1173_v62, %v1110_v22  ;;  %v1304_v26 = vadd.f32 %v1303_v0, %v1241_v20  ;;  %v1121_v22 = vsel %vm1057_vm8, %v3628_v7, 0.0 }
 0x1bb   : > { %v1175_v12 = vadd.f32 %v1174_v10, %v1111_v36  ;;  %v1305_v42 = vadd.f32 %v1304_v26, %v1242_v44  ;;  %v3627_v10 = vld [vmem:[#allocation64_spill] sm:$0xff]  ;;  %v3631_v44 = vld [vmem:[#allocation66_spill] sm:$0xff]  ;;  %v3633_v26 = vld [vmem:[#allocation67_spill] sm:$0xff] }
 0x1bc   : > { %vm1058_vm9 = vcmp.lt.s32.totalorder %v3627_v10, 1000  ;;  %vm1060_vm11 = vcmp.lt.s32.totalorder %v3631_v44, 1000  ;;  %vm1061_vm12 = vcmp.lt.s32.totalorder %v3633_v26, 1000  ;;  %v1258_v10 = vmul.f32 %v1121_v22, %v1121_v22  ;;  %v1130_v26 = vld [vmem:[#allocation2] sm:$0x1] }
 0x1bd   : > { %v1176_v58 = vadd.f32 %v1175_v12, %v1112_v59  ;;  %v1306_v63 = vadd.f32 %v1305_v42, %v1243_v9  ;;  %v1122_v36 = vsel %vm1058_vm9, %v3630_v1, 0.0 }
 0x1be   : > { %v1259_v7 = vmul.f32 %v1122_v36, %v1122_v36 }
 0x1bf   : > { %v1177_v60 = vadd.f32 %v1176_v58, %v1113_v57  ;;  %v1307_v30 = vadd.f32 %v1306_v63, %v1244_v61  ;;  %v1251_v58 = vmul.f32 %v1114_v35, %v1114_v35  ;;  %v1124_v57 = vsel %vm1060_vm11, %v3634_v25, 0.0 }
 0x1c0   : > { %v1253_v61 = vmul.f32 %v1116_v19, %v1116_v19  ;;  %v1254_v63 = vmul.f32 %v1117_v34, %v1117_v34  ;;  %v1261_v1 = vmul.f32 %v1124_v57, %v1124_v57 }
 0x1c1   : > { %v1178_v54 = vadd.f32 %v1177_v60, %v1114_v35  ;;  %v1308_v11 = vadd.f32 %v1307_v30, %v1245_v31  ;;  %v3632_v60 = vld [vmem:[#allocation46_spill] sm:$0xff]  ;;  %v3638_v30 = vld [vmem:[#allocation56_spill] sm:$0xff] }
 0x1c2   : > { %v1123_v59 = vsel %vm1059_vm10, %v3632_v60, 0.0  ;;  %v3636_v31 = vld [vmem:[#allocation50_spill] sm:$0xff] }
 0x1c3   : > { %v1179_v2 = vadd.f32 %v1178_v54, %v1115_v17  ;;  %v1309_v21 = vadd.f32 %v1308_v11, %v1246_v18  ;;  %v1125_v35 = vsel %vm1061_vm12, %v3636_v31, 0.0  ;;  %v3640_v11 = vld [vmem:[#allocation54_spill] sm:$0xff]  ;;  %v1260_v16 = vmul.f32 %v1123_v59, %v1123_v59 }
 0x1c4   : > { %v1262_v44 = vmul.f32 %v1125_v35, %v1125_v35 }
 0x1c5   : > { %v1180_v56 = vadd.f32 %v1179_v2, %v1116_v19  ;;  %v1310_v29 = vadd.f32 %v1309_v21, %v1247_v4  ;;  %v3635_v2 = vld [vmem:[#allocation68_spill] sm:$0xff]  ;;  %v1127_v19 = vsel %vm1063_vm14, %v3640_v11, 0.0 }
 0x1c6   : > { %vm1062_vm13 = vcmp.lt.s32.totalorder %v3635_v2, 1000  ;;  %v3642_v21 = vld [vmem:[#allocation60_spill] sm:$0xff] }
 0x1c7   : > { %v1181_v6 = vadd.f32 %v1180_v56, %v1117_v34  ;;  %v1311_v12 = vadd.f32 %v1310_v29, %v1248_v32  ;;  %v1126_v17 = vsel %vm1062_vm13, %v3638_v30, 0.0  ;;  %v1128_v34 = vsel %vm1064_vm15, %v3642_v21, 0.0 }
 0x1c9   : > { %v1182_v8 = vadd.f32 %v1181_v6, %v1118_v15  ;;  %v1312_v13 = vadd.f32 %v1311_v12, %v1249_v24  ;;  %v3643_v24 = vld [vmem:[#allocation58_spill] sm:$0xff] }
 0x1ca   : > { %v1129_v29 = vsel %vm1065_vm0, %v3643_v24, 0.0 }
 0x1cb   : > { %v1183_v62 = vadd.f32 %v1182_v8, %v1119_v38  ;;  %v1313_v9 = vadd.f32 %v1312_v13, %v1250_v14  ;;  %v1266_v2 = vmul.f32 %v1129_v29, %v1129_v29 }
 0x1cd   : > { %v1184_v27 = vadd.f32 %v1183_v62, %v1120_v28  ;;  %v1314_v42 = vadd.f32 %v1313_v9, %v1251_v58  ;;  %v1263_v28 = vmul.f32 %v1126_v17, %v1126_v17 }
 0x1cf   : > { %v1185_v20 = vadd.f32 %v1184_v27, %v1121_v22  ;;  %v1315_v56 = vadd.f32 %v1314_v42, %v1252_v3 }
 0x1d1   : > { %v1186_v0 = vadd.f32 %v1185_v20, %v1122_v36  ;;  %v1316_v6 = vadd.f32 %v1315_v56, %v1253_v61  ;;  %v1265_v61 = vmul.f32 %v1128_v34, %v1128_v34 }
 0x1d3   : > { %v1187_v54 = vadd.f32 %v1186_v0, %v1123_v59  ;;  %v1317_v8 = vadd.f32 %v1316_v6, %v1254_v63 }
 0x1d5   : > { %v1188_v23 = vadd.f32 %v1187_v54, %v1124_v57  ;;  %v1318_v62 = vadd.f32 %v1317_v8, %v1255_v50  ;;  %v1264_v54 = vmul.f32 %v1127_v19, %v1127_v19 }
 0x1d7   : > { %v1189_v18 = vadd.f32 %v1188_v23, %v1125_v35  ;;  %v1319_v15 = vadd.f32 %v1318_v62, %v1256_v52 }
 0x1d9   : > { %v1190_v4 = vadd.f32 %v1189_v18, %v1126_v17  ;;  %v1320_v14 = vadd.f32 %v1319_v15, %v1257_v46  ;;  %v1202_v18 = vld [vmem:[#allocation3] sm:$0x1] }
 0x1db   : > { %v1191_v32 = vadd.f32 %v1190_v4, %v1127_v19  ;;  %v1321_v20 = vadd.f32 %v1320_v14, %v1258_v10 }
 0x1dd   : > { %v1192_v5 = vadd.f32 %v1191_v32, %v1128_v34  ;;  %v1322_v58 = vadd.f32 %v1321_v20, %v1259_v7 }
 0x1df   : > { %v1193_v27 = vadd.f32 %v1192_v5, %v1129_v29  ;;  %v1323_v0 = vadd.f32 %v1322_v58, %v1260_v16 }
 0x1e1   : > { %v1194_v12 = vrot.slane %v1193_v27, 4  ;;  %v1324_v3 = vadd.f32 %v1323_v0, %v1261_v1 }
 0x1e3   : > { %v1195_v38 = vadd.f32 %v1194_v12, %v1193_v27  ;;  %v1325_v22 = vadd.f32 %v1324_v3, %v1262_v44 }
 0x1e5   : > { %v1196_v13 = vrot.slane %v1195_v38, 2  ;;  %v1326_v36 = vadd.f32 %v1325_v22, %v1263_v28 }
 0x1e7   : > { %v1197_v60 = vadd.f32 %v1196_v13, %v1195_v38  ;;  %v1327_v59 = vadd.f32 %v1326_v36, %v1264_v54 }
 0x1e9   : > { %v1198_v9 = vrot.slane %v1197_v60, 1  ;;  %v1328_v23 = vadd.f32 %v1327_v59, %v1265_v61 }
 0x1eb   : > { %v1199_v25 = vadd.f32 %v1198_v9, %v1197_v60  ;;  %v1329_v57 = vadd.f32 %v1328_v23, %v1266_v2 }
 0x1ed   : > { %v1200_v42 = vadd.f32 %v1199_v25, %v1130_v26  ;;  %v1330_v31 = vrot.slane %v1329_v57, 4 }
 0x1ef   : > { %1201 = vst [vmem:[#allocation2] sm:$0x1] %v1200_v42  ;;  %v1331_v63 = vadd.f32 %v1330_v31, %v1329_v57 }
 0x1f1   : > { %v1332_v35 = vrot.slane %v1331_v63, 2 }
 0x1f3   : > { %v1333_v56 = vadd.f32 %v1332_v35, %v1331_v63 }
 0x1f5   : > { %v1334_v53 = vrot.slane %v1333_v56, 1 }
 0x1f7   : > { %v1335_v30 = vadd.f32 %v1334_v53, %v1333_v56 }
 0x1f9   : > { %v1336_v17 = vadd.f32 %v1335_v30, %v1202_v18 }
 0x1fb   : > { %1337 = vst [vmem:[#allocation3] sm:$0x1] %v1336_v17 }
 0x1fc PF: > { %p1873_p3 = scmp.ne.s32.totalorder %s2249_s13, 1 }
 0x1fd   : > { %v1342_v50 = vld [vmem:[#allocation2] sm:$0x1] (!%p1873_p3)  ;;  %v1350_v48 = vlaneseq (!%p1873_p3)  ;;  %v3644_v34 = vld [vmem:[#allocation9_spill] sm:$0xff] (!%p1873_p3)  ;;  %v3645_v62 = vld [vmem:[#allocation7_spill] sm:$0xff] (!%p1873_p3) }
 0x1fe   : > { %1341 = sbr.rel (%p1873_p3) target bundleno = 603 (0x25b), region = 40  ;;  %v1343_v4 = vmul.f32 (!%p1873_p3), 0.001, %v1342_v50  ;;  %v3646_v24 = vld [vmem:[#allocation13_spill] sm:$0xff] (!%p1873_p3)  ;;  %v3647_v10 = vld [vmem:[#allocation11_spill] sm:$0xff] (!%p1873_p3)  ;;  %v3654_v28 = vld [vmem:[#allocation28_spill] sm:$0xff] (!%p1873_p3) }
 0x1ff   : > { %v2938_v19 = vshrl.u32 (!%p1873_p3), %v1350_v48, 7  ;;  %v3648_v7 = vld [vmem:[#allocation17_spill] sm:$0xff] (!%p1873_p3)  ;;  %v3649_v12 = vld [vmem:[#allocation15_spill] sm:$0xff] (!%p1873_p3)  ;;  %v3655_v23 = vld [vmem:[#allocation38_spill] sm:$0xff] (!%p1873_p3) }
 0x200   : > { %v1346_v52 = vmul.f32 (!%p1873_p3), %v1343_v4, %v1343_v4  ;;  %v3650_v20 = vld [vmem:[#allocation21_spill] sm:$0xff] (!%p1873_p3)  ;;  %v3651_v1 = vld [vmem:[#allocation19_spill] sm:$0xff] (!%p1873_p3)  ;;  %v3666_v17 = vld [vmem:[#allocation10_spill] sm:$0xff] (!%p1873_p3) }
 0x201   : > { %v1352_v8 = vsub.s32 (!%p1873_p3), 0, %v2938_v19  ;;  %v3652_v13 = vld [vmem:[#allocation25_spill] sm:$0xff] (!%p1873_p3)  ;;  %v3653_v0 = vld [vmem:[#allocation23_spill] sm:$0xff] (!%p1873_p3)  ;;  %v3669_v19 = vld [vmem:[#allocation12_spill] sm:$0xff] (!%p1873_p3) }
 0x202   : > { %v1344_v6 = vld [vmem:[#allocation3] sm:$0x1] (!%p1873_p3)  ;;  %v3656_v31 = vld [vmem:[#allocation43_spill] sm:$0xff] (!%p1873_p3)  ;;  %v3657_v35 = vld [vmem:[#allocation41_spill] sm:$0xff] (!%p1873_p3) }
 0x203   : > { %v1345_v11 = vmul.f32 (!%p1873_p3), 0.001, %v1344_v6  ;;  %v2941_v32 = vrot.slane (!%p1873_p3), %v1343_v4, %v1352_v8  ;;  %v3658_v53 = vld [vmem:[#allocation47_spill] sm:$0xff] (!%p1873_p3)  ;;  %v3659_v30 = vld [vmem:[#allocation45_spill] sm:$0xff] (!%p1873_p3)  ;;  %v3667_v6 = vld [vmem:[#allocation8_spill] sm:$0xff] (!%p1873_p3) }
 0x204   : > { %v3660_v50 = vld [vmem:[#allocation51_spill] sm:$0xff] (!%p1873_p3)  ;;  %v3661_v48 = vld [vmem:[#allocation49_spill] sm:$0xff] (!%p1873_p3)  ;;  %v3668_v4 = vld [vmem:[#allocation14_spill] sm:$0xff] (!%p1873_p3) }
 0x205   : > { %v1347_v40 = vsub.f32 %v1345_v11, %v1346_v52  ;;  %v3662_v11 = vld [vmem:[#allocation55_spill] sm:$0xff]  ;;  %v3663_v52 = vld [vmem:[#allocation53_spill] sm:$0xff]  ;;  %v3672_v56 = vld [vmem:[#allocation22_spill] sm:$0xff]  ;;  %v3695_v54 = vsub.f32 %v3644_v34, %v2941_v32  ;;  %v3696_v15 = vsub.f32 %v3645_v62, %v2941_v32  ;;  %v3697_v29 = vsub.f32 %v3646_v24, %v2941_v32 }
 0x206   : > { %v3665_v18 = vld [vmem:[#allocation57_spill] sm:$0xff]  ;;  %v3673_v63 = vld [vmem:[#allocation20_spill] sm:$0xff]  ;;  %v3674_v57 = vld [vmem:[#allocation26_spill] sm:$0xff]  ;;  %v3698_v46 = vsub.f32 %v3647_v10, %v2941_v32  ;;  %v3699_v34 = vsub.f32 %v3648_v7, %v2941_v32  ;;  %v3700_v62 = vsub.f32 %v3649_v12, %v2941_v32  ;;  %v3701_v24 = vsub.f32 %v3650_v20, %v2941_v32 }
 0x207   : > { %v1348_v21 = vmax.f32 %v1347_v40, 0.0  ;;  %v3670_v40 = vld [vmem:[#allocation18_spill] sm:$0xff]  ;;  %v3675_v59 = vld [vmem:[#allocation24_spill] sm:$0xff]  ;;  %v3676_v2 = vld [vmem:[#allocation29_spill] sm:$0xff]  ;;  %v3702_v10 = vsub.f32 %v3651_v1, %v2941_v32  ;;  %v3703_v12 = vsub.f32 %v3652_v13, %v2941_v32 }
 0x208   : > { %v3677_v42 = vld [vmem:[#allocation27_spill] sm:$0xff] }
 0x209   : > { %v1419_v27 = vadd.f32 1e-05, %v1348_v21  ;;  %v3664_v21 = vld [vmem:[#allocation59_spill] sm:$0xff] }
 0x20b   : > { %2165 = vrsqrt.f32 %v1419_v27  ;;  %v3671_v27 = vld [vmem:[#allocation16_spill] sm:$0xff] }
 0x215   : > { %v2166_v14 = vpop.eup %2165 }
 0x216   : > { %v3051_v58 = vrot.slane %v2166_v14, %v1352_v8 }
 0x218   : > { %v1427_v26 = vmul.f32 %v3051_v58, %v3695_v54  ;;  %v1428_v22 = vmul.f32 %v3051_v58, %v3696_v15  ;;  %v1429_v5 = vmul.f32 %v3051_v58, %v3697_v29  ;;  %v1430_v14 = vmul.f32 %v3051_v58, %v3698_v46 }
 0x219   : > { %v1431_v54 = vmul.f32 %v3051_v58, %v3699_v34  ;;  %v1432_v15 = vmul.f32 %v3051_v58, %v3700_v62  ;;  %v1433_v29 = vmul.f32 %v3051_v58, %v3701_v24  ;;  %v1434_v46 = vmul.f32 %v3051_v58, %v3702_v10 }
 0x21a   : > { %v1491_v8 = vmul.f32 0.1, %v1427_v26  ;;  %v1492_v7 = vmul.f32 0.1, %v1428_v22  ;;  %v1493_v34 = vmul.f32 0.1, %v1429_v5  ;;  %v1435_v62 = vmul.f32 %v3051_v58, %v3703_v12 }
 0x21b   : > { %v1494_v60 = vmul.f32 0.1, %v1430_v14  ;;  %v1495_v20 = vmul.f32 0.1, %v1431_v54  ;;  %v1496_v3 = vmul.f32 0.1, %v1432_v15  ;;  %v3704_v24 = vsub.f32 %v3653_v0, %v2941_v32 }
 0x21c   : > { %v1555_v10 = vmax.f32 %v1427_v26, %v1491_v8  ;;  %v1556_v9 = vmax.f32 %v1428_v22, %v1492_v7  ;;  %v1557_v16 = vmax.f32 %v1429_v5, %v1493_v34  ;;  %v1497_v38 = vmul.f32 0.1, %v1433_v29 }
 0x21d   : > { %v1436_v1 = vmul.f32 %v3051_v58, %v3704_v24  ;;  %v1558_v44 = vmax.f32 %v1430_v14, %v1494_v60  ;;  %v1559_v13 = vmax.f32 %v1431_v54, %v1495_v20  ;;  %v1560_v25 = vmax.f32 %v1432_v15, %v1496_v3 }
 0x21e   : > { %v1498_v12 = vmul.f32 0.1, %v1434_v46  ;;  %1619 = vst [vmem:[%s2364_s7] sm:$0xff] %v1555_v10  ;;  %1620 = vst [vmem:[%s2364_s7 + $0x8] sm:$0xff] %v1556_v9  ;;  %v1561_v61 = vmax.f32 %v1433_v29, %v1497_v38  ;;  %v1499_v0 = vmul.f32 0.1, %v1435_v62  ;;  %v3705_v26 = vsub.f32 %v3654_v28, %v2941_v32 }
 0x21f   : > { %1621 = vst [vmem:[%s2364_s7 + $0x10] sm:$0xff] %v1557_v16  ;;  %v1500_v36 = vmul.f32 0.1, %v1436_v1  ;;  %1622 = vst [vmem:[%s2364_s7 + $0x18] sm:$0xff] %v1558_v44  ;;  %v3706_v60 = vsub.f32 %v2558_v33, %v2941_v32  ;;  %v3707_v38 = vsub.f32 %v2570_v39, %v2941_v32  ;;  %v3708_v28 = vsub.f32 %v2566_v37, %v2941_v32 }
 0x220   : > { %v1437_v22 = vmul.f32 %v3051_v58, %v3705_v26  ;;  %1623 = vst [vmem:[%s2364_s7 + $0x20] sm:$0xff] %v1559_v13  ;;  %1624 = vst [vmem:[%s2364_s7 + $0x28] sm:$0xff] %v1560_v25  ;;  %v1562_v5 = vmax.f32 %v1434_v46, %v1498_v12  ;;  %v1563_v9 = vmax.f32 %v1435_v62, %v1499_v0 }
 0x221   : > { %v1438_v16 = vmul.f32 %v3051_v58, %v3706_v60  ;;  %v1439_v3 = vmul.f32 %v3051_v58, %v3707_v38  ;;  %v1440_v44 = vmul.f32 %v3051_v58, %v3708_v28  ;;  %1625 = vst [vmem:[%s2364_s7 + $0x30] sm:$0xff] %v1561_v61  ;;  %v1564_v25 = vmax.f32 %v1436_v1, %v1500_v36 }
 0x222   : > { %v1501_v8 = vmul.f32 0.1, %v1437_v22  ;;  %v3709_v14 = vsub.f32 %v2578_v43, %v2941_v32  ;;  %1626 = vst [vmem:[%s2364_s7 + $0x38] sm:$0xff] %v1562_v5  ;;  %v3710_v29 = vsub.f32 %v2574_v41, %v2941_v32  ;;  %1627 = vst [vmem:[%s2364_s7 + $0x40] sm:$0xff] %v1563_v9  ;;  %v3711_v43 = vsub.f32 %v2586_v47, %v2941_v32 }
 0x223   : > { %v1502_v54 = vmul.f32 0.1, %v1438_v16  ;;  %v1503_v39 = vmul.f32 0.1, %v1439_v3  ;;  %v1504_v15 = vmul.f32 0.1, %v1440_v44  ;;  %v3712_v7 = vsub.f32 %v2582_v45, %v2941_v32 }
 0x224   : > { %v1441_v33 = vmul.f32 %v3051_v58, %v3709_v14  ;;  %v1442_v37 = vmul.f32 %v3051_v58, %v3710_v29  ;;  %1628 = vst [vmem:[%s2364_s7 + $0x48] sm:$0xff] %v1564_v25  ;;  %v1565_v61 = vmax.f32 %v1437_v22, %v1501_v8  ;;  %v1443_v46 = vmul.f32 %v3051_v58, %v3711_v43 }
 0x225   : > { %v1444_v34 = vmul.f32 %v3051_v58, %v3712_v7  ;;  %v1566_v41 = vmax.f32 %v1438_v16, %v1502_v54  ;;  %v1567_v62 = vmax.f32 %v1439_v3, %v1503_v39  ;;  %v1568_v20 = vmax.f32 %v1440_v44, %v1504_v15 }
 0x226   : > { %v1505_v36 = vmul.f32 0.1, %v1441_v33  ;;  %v1506_v24 = vmul.f32 0.1, %v1442_v37  ;;  %1629 = vst [vmem:[%s2364_s7 + $0x50] sm:$0xff] %v1565_v61  ;;  %v3713_v47 = vsub.f32 %v2594_v51, %v2941_v32  ;;  %v3714_v0 = vsub.f32 %v2590_v49, %v2941_v32 }
 0x227   : > { %v1507_v10 = vmul.f32 0.1, %v1443_v46  ;;  %v1508_v13 = vmul.f32 0.1, %v1444_v34  ;;  %1630 = vst [vmem:[%s2364_s7 + $0x58] sm:$0xff] %v1566_v41  ;;  %1631 = vst [vmem:[%s2364_s7 + $0x60] sm:$0xff] %v1567_v62  ;;  %v3715_v22 = vsub.f32 %v2602_v55, %v2941_v32  ;;  %v3716_v51 = vsub.f32 %v3655_v23, %v2941_v32 }
 0x228   : > { %v1569_v1 = vmax.f32 %v1441_v33, %v1505_v36  ;;  %v1445_v12 = vmul.f32 %v3051_v58, %v3713_v47  ;;  %1632 = vst [vmem:[%s2364_s7 + $0x68] sm:$0xff] %v1568_v20  ;;  %v1570_v45 = vmax.f32 %v1442_v37, %v1506_v24  ;;  %v1446_v26 = vmul.f32 %v3051_v58, %v3714_v0 }
 0x229   : > { %v1447_v5 = vmul.f32 %v3051_v58, %v3715_v22  ;;  %v1448_v60 = vmul.f32 %v3051_v58, %v3716_v51  ;;  %v1571_v16 = vmax.f32 %v1443_v46, %v1507_v10  ;;  %v1572_v38 = vmax.f32 %v1444_v34, %v1508_v13 }
 0x22a   : > { %1633 = vst [vmem:[%s2364_s7 + $0x70] sm:$0xff] %v1569_v1  ;;  %v1509_v3 = vmul.f32 0.1, %v1445_v12  ;;  %v3717_v28 = vsub.f32 %v3656_v31, %v2941_v32  ;;  %1634 = vst [vmem:[%s2364_s7 + $0x78] sm:$0xff] %v1570_v45  ;;  %v1510_v44 = vmul.f32 0.1, %v1446_v26  ;;  %v3718_v25 = vsub.f32 %v3657_v35, %v2941_v32 }
 0x22b   : > { %v1511_v55 = vmul.f32 0.1, %v1447_v5  ;;  %v1512_v9 = vmul.f32 0.1, %v1448_v60  ;;  %1635 = vst [vmem:[%s2364_s7 + $0x80] sm:$0xff] %v1571_v16  ;;  %1636 = vst [vmem:[%s2364_s7 + $0x88] sm:$0xff] %v1572_v38  ;;  %v3719_v31 = vsub.f32 %v3658_v53, %v2941_v32  ;;  %v3720_v54 = vsub.f32 %v3659_v30, %v2941_v32 }
 0x22c   : > { %v1449_v49 = vmul.f32 %v3051_v58, %v3717_v28  ;;  %v1450_v23 = vmul.f32 %v3051_v58, %v3718_v25  ;;  %v1573_v8 = vmax.f32 %v1445_v12, %v1509_v3  ;;  %v1574_v35 = vmax.f32 %v1446_v26, %v1510_v44 }
 0x22d   : > { %v1451_v33 = vmul.f32 %v3051_v58, %v3719_v31  ;;  %v1452_v39 = vmul.f32 %v3051_v58, %v3720_v54  ;;  %v1575_v15 = vmax.f32 %v1447_v5, %v1511_v55  ;;  %v1576_v29 = vmax.f32 %v1448_v60, %v1512_v9 }
 0x22e   : > { %v1513_v14 = vmul.f32 0.1, %v1449_v49  ;;  %v1514_v37 = vmul.f32 0.1, %v1450_v23  ;;  %1637 = vst [vmem:[%s2364_s7 + $0x90] sm:$0xff] %v1573_v8  ;;  %v3721_v53 = vsub.f32 %v3660_v50, %v2941_v32  ;;  %1638 = vst [vmem:[%s2364_s7 + $0x98] sm:$0xff] %v1574_v35  ;;  %v3722_v7 = vsub.f32 %v3661_v48, %v2941_v32 }
 0x22f   : > { %v1515_v36 = vmul.f32 0.1, %v1451_v33  ;;  %v1516_v43 = vmul.f32 0.1, %v1452_v39  ;;  %1639 = vst [vmem:[%s2364_s7 + $0xa0] sm:$0xff] %v1575_v15  ;;  %1640 = vst [vmem:[%s2364_s7 + $0xa8] sm:$0xff] %v1576_v29  ;;  %v3723_v41 = vsub.f32 %v3662_v11, %v2941_v32  ;;  %v3724_v50 = vsub.f32 %v3663_v52, %v2941_v32 }
 0x230   : > { %v1577_v61 = vmax.f32 %v1449_v49, %v1513_v14  ;;  %v1453_v46 = vmul.f32 %v3051_v58, %v3721_v53  ;;  %v1578_v30 = vmax.f32 %v1450_v23, %v1514_v37  ;;  %v1454_v34 = vmul.f32 %v3051_v58, %v3722_v7 }
 0x231   : > { %v1455_v62 = vmul.f32 %v3051_v58, %v3723_v41  ;;  %v1456_v20 = vmul.f32 %v3051_v58, %v3724_v50  ;;  %v1579_v24 = vmax.f32 %v1451_v33, %v1515_v36  ;;  %v1580_v1 = vmax.f32 %v1452_v39, %v1516_v43 }
 0x232   : > { %1641 = vst [vmem:[%s2364_s7 + $0xb0] sm:$0xff] %v1577_v61  ;;  %v1517_v10 = vmul.f32 0.1, %v1453_v46  ;;  %v3725_v13 = vsub.f32 %v3664_v21, %v2941_v32  ;;  %1642 = vst [vmem:[%s2364_s7 + $0xb8] sm:$0xff] %v1578_v30  ;;  %v1518_v47 = vmul.f32 0.1, %v1454_v34  ;;  %v3726_v45 = vsub.f32 %v3665_v18, %v2941_v32 }
 0x233   : > { %v1519_v11 = vmul.f32 0.1, %v1455_v62  ;;  %v1520_v12 = vmul.f32 0.1, %v1456_v20  ;;  %1643 = vst [vmem:[%s2364_s7 + $0xc0] sm:$0xff] %v1579_v24  ;;  %1644 = vst [vmem:[%s2364_s7 + $0xc8] sm:$0xff] %v1580_v1  ;;  %v3727_v21 = vsub.f32 %v3666_v17, %v2941_v32  ;;  %v3728_v5 = vsub.f32 %v3667_v6, %v2941_v32 }
 0x234   : > { %v1457_v48 = vmul.f32 %v3051_v58, %v3725_v13  ;;  %v1458_v52 = vmul.f32 %v3051_v58, %v3726_v45  ;;  %v1581_v0 = vmax.f32 %v1453_v46, %v1517_v10  ;;  %v1582_v18 = vmax.f32 %v1454_v34, %v1518_v47  ;;  %v3739_v24 = vld [vmem:[#allocation31_spill] sm:$0xff]  ;;  %v3741_v13 = vld [vmem:[#allocation30_spill] sm:$0xff]  ;;  %v3743_v45 = vld [vmem:[#allocation33_spill] sm:$0xff] }
 0x235   : > { %v1459_v22 = vmul.f32 %v3051_v58, %v3727_v21  ;;  %v1460_v51 = vmul.f32 %v3051_v58, %v3728_v5  ;;  %v1583_v60 = vmax.f32 %v1455_v62, %v1519_v11  ;;  %v1584_v16 = vmax.f32 %v1456_v20, %v1520_v12 }
 0x236   : > { %v1521_v26 = vmul.f32 0.1, %v1457_v48  ;;  %v1522_v38 = vmul.f32 0.1, %v1458_v52  ;;  %1645 = vst [vmem:[%s2364_s7 + $0xd0] sm:$0xff] %v1581_v0  ;;  %v3729_v17 = vsub.f32 %v3668_v4, %v2941_v32  ;;  %1646 = vst [vmem:[%s2364_s7 + $0xd8] sm:$0xff] %v1582_v18  ;;  %v3730_v55 = vsub.f32 %v3669_v19, %v2941_v32 }
 0x237   : > { %v1523_v28 = vmul.f32 0.1, %v1459_v22  ;;  %v1524_v49 = vmul.f32 0.1, %v1460_v51  ;;  %1647 = vst [vmem:[%s2364_s7 + $0xe0] sm:$0xff] %v1583_v60  ;;  %1648 = vst [vmem:[%s2364_s7 + $0xe8] sm:$0xff] %v1584_v16  ;;  %v3731_v25 = vsub.f32 %v3670_v40, %v2941_v32  ;;  %v3732_v4 = vsub.f32 %v3671_v27, %v2941_v32 }
 0x238   : > { %v1585_v3 = vmax.f32 %v1457_v48, %v1521_v26  ;;  %v1461_v44 = vmul.f32 %v3051_v58, %v3729_v17  ;;  %v1586_v6 = vmax.f32 %v1458_v52, %v1522_v38  ;;  %v1462_v9 = vmul.f32 %v3051_v58, %v3730_v55  ;;  %v3747_v16 = vld [vmem:[#allocation35_spill] sm:$0xff] }
 0x239   : > { %v1463_v23 = vmul.f32 %v3051_v58, %v3731_v25  ;;  %v1464_v8 = vmul.f32 %v3051_v58, %v3732_v4  ;;  %v1587_v14 = vmax.f32 %v1459_v22, %v1523_v28  ;;  %v1588_v31 = vmax.f32 %v1460_v51, %v1524_v49  ;;  %v3745_v22 = vld [vmem:[#allocation32_spill] sm:$0xff]  ;;  %v3749_v28 = vld [vmem:[#allocation34_spill] sm:$0xff] }
 0x23a   : > { %1649 = vst [vmem:[%s2364_s7 + $0xf0] sm:$0xff] %v1585_v3  ;;  %v1525_v33 = vmul.f32 0.1, %v1461_v44  ;;  %v3733_v54 = vsub.f32 %v3672_v56, %v2941_v32  ;;  %1650 = vst [vmem:[%s2364_s7 + $0xf8] sm:$0xff] %v1586_v6  ;;  %v1526_v39 = vmul.f32 0.1, %v1462_v9  ;;  %v3734_v15 = vsub.f32 %v3673_v63, %v2941_v32 }
 0x23b   : > { %v1527_v40 = vmul.f32 0.1, %v1463_v23  ;;  %v1528_v35 = vmul.f32 0.1, %v1464_v8  ;;  %1651 = vst [vmem:[%s2364_s7 + $0x100] sm:$0xff] %v1587_v14  ;;  %1652 = vst [vmem:[%s2364_s7 + $0x108] sm:$0xff] %v1588_v31  ;;  %v3735_v56 = vsub.f32 %v3674_v57, %v2941_v32  ;;  %v3736_v36 = vsub.f32 %v3675_v59, %v2941_v32 }
 0x23c   : > { %v1465_v19 = vmul.f32 %v3051_v58, %v3733_v54  ;;  %v1466_v27 = vmul.f32 %v3051_v58, %v3734_v15  ;;  %v1589_v29 = vmax.f32 %v1461_v44, %v1525_v33  ;;  %v1590_v63 = vmax.f32 %v1462_v9, %v1526_v39  ;;  %v3753_v54 = vld [vmem:[#allocation36_spill] sm:$0xff] }
 0x23d   : > { %v1467_v61 = vmul.f32 %v3051_v58, %v3735_v56  ;;  %v1468_v43 = vmul.f32 %v3051_v58, %v3736_v36  ;;  %v1591_v53 = vmax.f32 %v1463_v23, %v1527_v40  ;;  %v1592_v46 = vmax.f32 %v1464_v8, %v1528_v35  ;;  %v3751_v8 = vld [vmem:[#allocation37_spill] sm:$0xff]  ;;  %v3755_v40 = vld [vmem:[#allocation40_spill] sm:$0xff] }
 0x23e   : > { %v1529_v37 = vmul.f32 0.1, %v1465_v19  ;;  %v1530_v30 = vmul.f32 0.1, %v1466_v27  ;;  %1653 = vst [vmem:[%s2364_s7 + $0x110] sm:$0xff] %v1589_v29  ;;  %v3737_v57 = vsub.f32 %v3676_v2, %v2941_v32  ;;  %1654 = vst [vmem:[%s2364_s7 + $0x118] sm:$0xff] %v1590_v63  ;;  %v3738_v50 = vsub.f32 %v3677_v42, %v2941_v32 }
 0x23f   : > { %v1531_v34 = vmul.f32 0.1, %v1467_v61  ;;  %v1532_v41 = vmul.f32 0.1, %v1468_v43  ;;  %1655 = vst [vmem:[%s2364_s7 + $0x120] sm:$0xff] %v1591_v53  ;;  %1656 = vst [vmem:[%s2364_s7 + $0x128] sm:$0xff] %v1592_v46  ;;  %v3740_v1 = vsub.f32 %v3739_v24, %v2941_v32  ;;  %v3742_v2 = vsub.f32 %v3741_v13, %v2941_v32 }
 0x240   : > { %v1593_v7 = vmax.f32 %v1465_v19, %v1529_v37  ;;  %v1469_v62 = vmul.f32 %v3051_v58, %v3737_v57  ;;  %v1594_v59 = vmax.f32 %v1466_v27, %v1530_v30  ;;  %v1470_v20 = vmul.f32 %v3051_v58, %v3738_v50  ;;  %v3757_v27 = vld [vmem:[#allocation39_spill] sm:$0xff]  ;;  %v3763_v50 = vld [vmem:[#allocation48_spill] sm:$0xff] }
 0x241   : > { %v1471_v10 = vmul.f32 %v3051_v58, %v3740_v1  ;;  %v1472_v48 = vmul.f32 %v3051_v58, %v3742_v2  ;;  %v1595_v47 = vmax.f32 %v1467_v61, %v1531_v34  ;;  %v1596_v11 = vmax.f32 %v1468_v43, %v1532_v41  ;;  %v3759_v43 = vld [vmem:[#allocation44_spill] sm:$0xff]  ;;  %v3761_v34 = vld [vmem:[#allocation42_spill] sm:$0xff] }
 0x242   : > { %1657 = vst [vmem:[%s2364_s7 + $0x130] sm:$0xff] %v1593_v7  ;;  %v1533_v12 = vmul.f32 0.1, %v1469_v62  ;;  %v3744_v52 = vsub.f32 %v3743_v45, %v2941_v32  ;;  %1658 = vst [vmem:[%s2364_s7 + $0x138] sm:$0xff] %v1594_v59  ;;  %v1534_v0 = vmul.f32 0.1, %v1470_v20  ;;  %v3746_v5 = vsub.f32 %v3745_v22, %v2941_v32 }
 0x243   : > { %v1535_v26 = vmul.f32 0.1, %v1471_v10  ;;  %v1536_v21 = vmul.f32 0.1, %v1472_v48  ;;  %1659 = vst [vmem:[%s2364_s7 + $0x140] sm:$0xff] %v1595_v47  ;;  %1660 = vst [vmem:[%s2364_s7 + $0x148] sm:$0xff] %v1596_v11  ;;  %v3748_v38 = vsub.f32 %v3747_v16, %v2941_v32  ;;  %v3750_v49 = vsub.f32 %v3749_v28, %v2941_v32 }
 0x244   : > { %v1473_v42 = vmul.f32 %v3051_v58, %v3744_v52  ;;  %v1474_v51 = vmul.f32 %v3051_v58, %v3746_v5  ;;  %v1597_v18 = vmax.f32 %v1469_v62, %v1533_v12  ;;  %v1598_v44 = vmax.f32 %v1470_v20, %v1534_v0  ;;  %v3765_v1 = vld [vmem:[#allocation46_spill] sm:$0xff] }
 0x245   : > { %v1475_v3 = vmul.f32 %v3051_v58, %v3748_v38  ;;  %v1476_v17 = vmul.f32 %v3051_v58, %v3750_v49  ;;  %v1599_v6 = vmax.f32 %v1471_v10, %v1535_v26  ;;  %v1600_v55 = vmax.f32 %v1472_v48, %v1536_v21  ;;  %v3769_v22 = vld [vmem:[#allocation50_spill] sm:$0xff] }
 0x246   : > { %v1537_v60 = vmul.f32 0.1, %v1473_v42  ;;  %v1538_v9 = vmul.f32 0.1, %v1474_v51  ;;  %1661 = vst [vmem:[%s2364_s7 + $0x150] sm:$0xff] %v1597_v18  ;;  %v3752_v14 = vsub.f32 %v3751_v8, %v2941_v32  ;;  %1662 = vst [vmem:[%s2364_s7 + $0x158] sm:$0xff] %v1598_v44  ;;  %v3754_v19 = vsub.f32 %v3753_v54, %v2941_v32 }
 0x247   : > { %v1539_v23 = vmul.f32 0.1, %v1475_v3  ;;  %v1540_v4 = vmul.f32 0.1, %v1476_v17  ;;  %1663 = vst [vmem:[%s2364_s7 + $0x160] sm:$0xff] %v1599_v6  ;;  %1664 = vst [vmem:[%s2364_s7 + $0x168] sm:$0xff] %v1600_v55  ;;  %v3756_v35 = vsub.f32 %v3755_v40, %v2941_v32  ;;  %v3758_v29 = vsub.f32 %v3757_v27, %v2941_v32 }
 0x248   : > { %v1601_v25 = vmax.f32 %v1473_v42, %v1537_v60  ;;  %v1477_v31 = vmul.f32 %v3051_v58, %v3752_v14  ;;  %v1602_v33 = vmax.f32 %v1474_v51, %v1538_v9  ;;  %v1478_v39 = vmul.f32 %v3051_v58, %v3754_v19  ;;  %v3767_v42 = vld [vmem:[#allocation52_spill] sm:$0xff]  ;;  %v3773_v38 = vld [vmem:[#allocation54_spill] sm:$0xff] }
 0x249   : > { %v1479_v15 = vmul.f32 %v3051_v58, %v3756_v35  ;;  %v1480_v37 = vmul.f32 %v3051_v58, %v3758_v29  ;;  %v1603_v56 = vmax.f32 %v1475_v3, %v1539_v23  ;;  %v1604_v61 = vmax.f32 %v1476_v17, %v1540_v4  ;;  %v3771_v18 = vld [vmem:[#allocation56_spill] sm:$0xff]  ;;  %v3775_v23 = vld [vmem:[#allocation58_spill] sm:$0xff] }
 0x24a   : > { %1665 = vst [vmem:[%s2364_s7 + $0x170] sm:$0xff] %v1601_v25  ;;  %v1541_v36 = vmul.f32 0.1, %v1477_v31  ;;  %v3760_v63 = vsub.f32 %v3759_v43, %v2941_v32  ;;  %1666 = vst [vmem:[%s2364_s7 + $0x178] sm:$0xff] %v1602_v33  ;;  %v1542_v46 = vmul.f32 0.1, %v1478_v39  ;;  %v3762_v41 = vsub.f32 %v3761_v34, %v2941_v32 }
 0x24b   : > { %v1543_v30 = vmul.f32 0.1, %v1479_v15  ;;  %v1544_v7 = vmul.f32 0.1, %v1480_v37  ;;  %1667 = vst [vmem:[%s2364_s7 + $0x180] sm:$0xff] %v1603_v56  ;;  %1668 = vst [vmem:[%s2364_s7 + $0x188] sm:$0xff] %v1604_v61  ;;  %v3764_v20 = vsub.f32 %v3763_v50, %v2941_v32  ;;  %v3766_v10 = vsub.f32 %v3765_v1, %v2941_v32 }
 0x24c   : > { %v1481_v53 = vmul.f32 %v3051_v58, %v3760_v63  ;;  %v1482_v57 = vmul.f32 %v3051_v58, %v3762_v41  ;;  %v1605_v62 = vmax.f32 %v1477_v31, %v1541_v36  ;;  %v1606_v2 = vmax.f32 %v1478_v39, %v1542_v46  ;;  %v3774_v44 = vld [vmem:[#allocation60_spill] sm:$0xff] }
 0x24d   : > { %v1483_v24 = vmul.f32 %v3051_v58, %v3764_v20  ;;  %v1484_v13 = vmul.f32 %v3051_v58, %v3766_v10  ;;  %v1607_v48 = vmax.f32 %v1479_v15, %v1543_v30  ;;  %v1608_v47 = vmax.f32 %v1480_v37, %v1544_v7 }
 0x24e   : > { %v1545_v59 = vmul.f32 0.1, %v1481_v53  ;;  %v1546_v11 = vmul.f32 0.1, %v1482_v57  ;;  %1669 = vst [vmem:[%s2364_s7 + $0x190] sm:$0xff] %v1605_v62  ;;  %v3768_v0 = vsub.f32 %v3767_v42, %v2941_v32  ;;  %1670 = vst [vmem:[%s2364_s7 + $0x198] sm:$0xff] %v1606_v2  ;;  %v3770_v5 = vsub.f32 %v3769_v22, %v2941_v32 }
 0x24f   : > { %v1547_v45 = vmul.f32 0.1, %v1483_v24  ;;  %v1548_v52 = vmul.f32 0.1, %v1484_v13  ;;  %1671 = vst [vmem:[%s2364_s7 + $0x1a0] sm:$0xff] %v1607_v48  ;;  %1672 = vst [vmem:[%s2364_s7 + $0x1a8] sm:$0xff] %v1608_v47  ;;  %v3772_v60 = vsub.f32 %v3771_v18, %v2941_v32  ;;  %v1416_v3 = vsub.f32 %v3773_v38, %v2941_v32 }
 0x250   : > { %v1609_v12 = vmax.f32 %v1481_v53, %v1545_v59  ;;  %v1485_v26 = vmul.f32 %v3051_v58, %v3768_v0  ;;  %v1610_v21 = vmax.f32 %v1482_v57, %v1546_v11  ;;  %v1486_v51 = vmul.f32 %v3051_v58, %v3770_v5 }
 0x251   : > { %v1487_v16 = vmul.f32 %v3051_v58, %v3772_v60  ;;  %v1611_v28 = vmax.f32 %v1483_v24, %v1547_v45  ;;  %v1612_v49 = vmax.f32 %v1484_v13, %v1548_v52  ;;  %v1417_v6 = vsub.f32 %v3774_v44, %v2941_v32 }
 0x252   : > { %1673 = vst [vmem:[%s2364_s7 + $0x1b0] sm:$0xff] %v1609_v12  ;;  %v1549_v17 = vmul.f32 0.1, %v1485_v26  ;;  %1674 = vst [vmem:[%s2364_s7 + $0x1b8] sm:$0xff] %v1610_v21  ;;  %v1550_v55 = vmul.f32 0.1, %v1486_v51  ;;  %v1488_v25 = vmul.f32 %v3051_v58, %v1416_v3  ;;  %v1418_v4 = vsub.f32 %v3775_v23, %v2941_v32 }
 0x253   : > { %v1551_v9 = vmul.f32 0.1, %v1487_v16  ;;  %1675 = vst [vmem:[%s2364_s7 + $0x1c0] sm:$0xff] %v1611_v28  ;;  %1676 = vst [vmem:[%s2364_s7 + $0x1c8] sm:$0xff] %v1612_v49  ;;  %v1489_v14 = vmul.f32 %v3051_v58, %v1417_v6 }
 0x254   : > { %v1613_v8 = vmax.f32 %v1485_v26, %v1549_v17  ;;  %v1614_v31 = vmax.f32 %v1486_v51, %v1550_v55  ;;  %v1552_v54 = vmul.f32 0.1, %v1488_v25  ;;  %v1490_v19 = vmul.f32 %v3051_v58, %v1418_v4 }
 0x255   : > { %v1615_v33 = vmax.f32 %v1487_v16, %v1551_v9  ;;  %v1553_v39 = vmul.f32 0.1, %v1489_v14 }
 0x256   : > { %1677 = vst [vmem:[%s2364_s7 + $0x1d0] sm:$0xff] %v1613_v8  ;;  %1678 = vst [vmem:[%s2364_s7 + $0x1d8] sm:$0xff] %v1614_v31  ;;  %v1616_v40 = vmax.f32 %v1488_v25, %v1552_v54  ;;  %v1554_v35 = vmul.f32 0.1, %v1490_v19 }
 0x257   : > { %1679 = vst [vmem:[%s2364_s7 + $0x1e0] sm:$0xff] %v1615_v33  ;;  %v1617_v32 = vmax.f32 %v1489_v14, %v1553_v39 }
 0x258   : > { %1680 = vst [vmem:[%s2364_s7 + $0x1e8] sm:$0xff] %v1616_v40  ;;  %v1618_v15 = vmax.f32 %v1490_v19, %v1554_v35 }
 0x259   : > { %1681 = vst [vmem:[%s2364_s7 + $0x1f0] sm:$0xff] %v1617_v32 }
 0x25a   : > { %1682 = vst [vmem:[%s2364_s7 + $0x1f8] sm:$0xff] %v1618_v15 }
 0x25b PF: > { %s3386_s24 = scalar_lea.sflag [#allocation5], %s183_s28  ;;  %1690 = sbr.rel (!%p2335_p6) target bundleno = 638 (0x27e), region = 44 }
 0x25c   : > { %s1691_s25 = smul.u32 (%p2335_p6), %s2245_s12, %s2249_s13 }
 0x25e   : > { %s1875_s26 = sshll.u32 (%p2335_p6), %s1691_s25, 6 }
 0x25f   : > { %s1693_s29 = ssub.s32 (%p2335_p6), 125, %s1875_s26 }
 0x260   : > { %p1694_p4 = scmp.lt.s32.totalorder (%p2335_p6), %s1693_s29, 64 }
 0x262   : > { %s3792_s29 = smov (!%p1694_p4, %s1693_s29), 64 }
 0x263   : > { %s3392_s30 = sshll.u32 %s3792_s29, 7 }
 0x264   : > { %s1698_s3 = ssub.s32 8192, %s3392_s30 }
 0x265   : > { %1699 = vsyncadd %s3386_s24, %s1698_s3  ;;  %p1877_p5 = scmp.ne.s32.totalorder %s3392_s30, 0  ;;  %s1883_s22 = sshll.u32 %s1691_s25, 13 }
 0x266   : > { %s3400_s5 = scalar_lea.hbm %s3460_s2, %s1883_s22  ;;  %s1705_s12 = sshll.u32 %s2364_s7, 4  ;;  %s3403_s12 = int_to_ptr.vmem [resolvable:$true] %s1705_s12 }
 0x267   : > { %s2167_s13 = scalar_lea.vmem %s3403_s12, %s3392_s30  ;;  %s2264_s8 = smov [#allocation4]  }
 0x268   : > { %p2168_p6 = scmp.ne.s32.totalorder %s3403_s12, %s2167_s13  ;;  %s2171_s17 = sshll.u32 %s2264_s8, 4  ;;  %s2172_s17 = int_to_ptr.vmem [resolvable:$false] %s2171_s17 }
 0x269   : > { %s2173_s18 = scalar_lea.vmem %s2172_s17, 16384  ;;  %p2174_p10 = scmp.lt.s32.totalorder %s3403_s12, %s2172_s17 }
 0x26a   : > { %p2169_p7 = pnand %p2168_p6, %p1877_p5  ;;  %p2175_p11 = scmp.lt.s32.totalorder %s2173_s18, %s2167_s13 }
 0x26c   : > { %p2170_p9 = pneg %p2169_p7  ;;  %p2176_p12 = por %p2175_p11, %p2174_p10 }
 0x26e   : > { %p2177_p13 = pnand %p2176_p12, %p2170_p9 }
 0x270   : > { %2180 = shalt.err (!%p2177_p13)
}
 0x271   : > { %s2181_s7 = scalar_lea.hbm %s3400_s5, %s3392_s30  ;;  %s2185_s25 = scalar_lea.hbm %s3460_s2, 16000 }
 0x272   : > { %p2182_p0 = scmp.ne.s32.totalorder %s3400_s5, %s2181_s7  ;;  %p2186_p3 = scmp.lt.u32.totalorder %s3400_s5, %s3460_s2 }
 0x273   : > { %p2187_p4 = scmp.lt.u32.totalorder %s2185_s25, %s2181_s7  ;;  %p2189_p7 = scmp.lt.u32.totalorder %s2181_s7, %s3400_s5 }
 0x274   : > { %p2183_p1 = pnand %p2182_p0, %p1877_p5 }
 0x275   : > { %p2188_p6 = por %p2187_p4, %p2186_p3 }
 0x276   : > { %p2184_p2 = pneg %p2183_p1 }
 0x277   : > { %p2190_p9 = por %p2189_p7, %p2188_p6 }
 0x279   : > { %p2191_p10 = pnand %p2190_p9, %p2184_p2 }
 0x27b   : > { %2194 = shalt.err (!%p2191_p10)
}
 0x27c   : > { %s2265_s3 = smov 128   ;;  %s2266_s22 = smov 8  }
 0x27d   : > { %1711 = dma.vmem_to_hbm [thread:$0]  (%p1877_p5), %s3403_s12, %s3392_s30, %s3400_s5, %s3386_s24, %s2265_s3, %s2265_s3, %s2266_s22  }
 0x27e PF: > { %p2097_p11 = scmp.ge.s32.totalorder %s2261_s16, 2  ;;  %s1720_s28 = sand.u32 1, %s2233_s9  }
 0x27f   : > { %s1721_s4 = scalar_lea.sflag [#allocation5], %s1720_s28 }
 0x280   : > { %p2094_p12 = pnand %p2097_p11, %p2342_p8 }
 0x282   : > { %2228 = dma.done.wait (!%p2094_p12), %s1721_s4, 8192  }
 0x283   : > { %2230 = vsyncadd (!%p2094_p12), %s1721_s4, 4294959104  ;;  %s15_s16 = sadd.s32 1, %s2261_s16   ;;  %s3776_s9 = smov %s2237_s10 }
 0x284   : > { %p12_p13 = scmp.ge.s32.totalorder %s15_s16, 6   ;;  %s3777_s10 = smov %s2241_s11 }
 0x285   : > { %s3778_s11 = smov %s2351_s27  ;;  %s3779_s12 = smov %s2253_s14 }
 0x286   : > { %s3780_s13 = smov %s2257_s15  ;;  %s3781_s14 = smov %s3784_s19 }
 0x287   : > { %s3782_s15 = smov %s3788_s20  ;;  %14 = sbr.rel (!%p12_p13) target bundleno = 5 (0x5), region = 78 }
 0x28e   :  { %1726 = vsyncpa [#allocation5], 1 }
 0x28f   :  { %1728 = vsyncpa [#allocation5 + $0x1], 1 }

</bundles_post_ra>
